<compile_context>
chip_gen: v6e
topology: v6e:2x2x1
jax: 0.10.0
libtpu: 0.0.40
codegen_flags: <defaults>
</compile_context>

<pallas_src>
import functools

import jax
import jax.numpy as jnp
import numpy as np
from jax.experimental import pallas as pl
from jax.experimental.pallas import tpu as pltpu


def _ssd_loss_kernel(loc_ref, plabel_ref, glabel_ref, dbox_ref, out_ref,
                     cont_ref, *, scale_xy, scale_wh, chunk):
    loc = loc_ref[...]          # (B, 8, A) f32  rows 0-3 = ploc, 4-7 = gloc
    logits = plabel_ref[...]    # (B, C, A) f32
    glabel = glabel_ref[...]    # (B, 1, A) i32
    db = dbox_ref[...]          # (1, 4, A) f32

    B, C, A = logits.shape

    mask = glabel > 0                                   # (B, 1, A)
    mask_f = mask.astype(jnp.float32)
    pos_num = jnp.sum(mask_f, axis=2, keepdims=True)    # (B, 1, 1)

    # ---- localization target (loc_vec) + SmoothL1 (beta=1, sum over coords)
    db_xy = db[:, :2, :]
    db_wh = db[:, 2:, :]
    gxy = scale_xy * (loc[:, 4:6, :] - db_xy) / db_wh           # (B, 2, A)
    # TODO(synk): like the PyTorch reference, log() of zero-filled padded
    # ground-truth wh produces NaN that mask_f * ... does not sanitize.
    gwh = scale_wh * jnp.log(loc[:, 6:8, :] / db_wh)            # (B, 2, A)

    def smooth_l1_sum(diff):
        ad = jnp.abs(diff)
        return jnp.sum(jnp.where(ad < 1.0, 0.5 * diff * diff, ad - 0.5),
                       axis=1, keepdims=True)                   # (B, 1, A)

    sl1 = smooth_l1_sum(loc[:, 0:2, :] - gxy) + smooth_l1_sum(loc[:, 2:4, :] - gwh)
    sl1_loss = jnp.sum(mask_f * sl1, axis=2, keepdims=True)     # (B, 1, 1)

    # ---- per-anchor cross entropy: con = lse(logits) - logits[glabel]
    mx = jnp.max(logits, axis=1, keepdims=True)                 # (B, 1, A)
    lse = jnp.log(jnp.sum(jnp.exp(logits - mx), axis=1, keepdims=True)) + mx
    cls_iota = jax.lax.broadcasted_iota(jnp.int32, (B, C, A), 1)
    tgt = jnp.sum(jnp.where(cls_iota == glabel, logits, 0.0),
                  axis=1, keepdims=True)                        # (B, 1, A)
    con = lse - tgt                                             # (B, 1, A)

    # ---- hard negative mining (chunked pairwise rank; no (A, A) intermediate)
    con_neg = jnp.where(mask, 0.0, con)                         # (B, 1, A)

    # One O(A) relayout per block: anchors lanes -> sublanes so the chunk loop
    # can slice j-columns straight off a VMEM scratch ref (no per-chunk
    # transpose and no value-dynamic-slice).
    for b in range(B):                                          # B is small, static
        cont_ref[b] = jnp.transpose(con_neg[b])                 # (A, 1)

    i_idx = jax.lax.broadcasted_iota(jnp.int32, (1, 1, A), 2)   # lane index
    n_chunks = A // chunk

    def body(k, rank_acc):
        j0 = pl.multiple_of(k * chunk, chunk)
        c_col = cont_ref[:, pl.ds(j0, chunk), :]                # (B, chunk, 1)
        j_idx = jax.lax.broadcasted_iota(jnp.int32, (1, chunk, 1), 1) + j0
        # rank contribution of this j-chunk against every anchor i:
        #   c[j] > c[i]   or   (c[j] == c[i] and j < i)   (stable descending)
        gt = c_col > con_neg                                    # (B, chunk, A)
        tie = (c_col == con_neg) & (j_idx < i_idx)
        return rank_acc + (gt | tie).astype(jnp.float32)

    rank_acc = jax.lax.fori_loop(
        0, n_chunks, body, jnp.zeros((B, chunk, A), jnp.float32))
    rank = jnp.sum(rank_acc, axis=1, keepdims=True)             # (B, 1, A)

    neg_num = jnp.minimum(3.0 * pos_num, float(A))              # (B, 1, 1)
    neg_mask_f = (rank < neg_num).astype(jnp.float32)           # (B, 1, A)

    closs = jnp.sum(con * (mask_f + neg_mask_f), axis=2, keepdims=True)

    total = sl1_loss + closs                                    # (B, 1, 1)
    num_mask = (pos_num > 0.0).astype(jnp.float32)
    denom = jnp.maximum(pos_num, 1e-6)
    per_elem = total * num_mask / denom                         # (B, 1, 1)

    # Scatter the B per-element scalars onto the lane axis -> single store.
    lane = jax.lax.broadcasted_iota(jnp.int32, (1, 1, B), 2)
    bidx = jax.lax.broadcasted_iota(jnp.int32, (B, 1, 1), 0)
    sel = (lane == bidx).astype(jnp.float32)                    # (B, 1, B)
    out_ref[...] = jnp.sum(per_elem * sel, axis=0, keepdims=True)   # (1, 1, B)


def ssd_loss(ploc, plabel, gloc, glabel, dboxes, scale_xy, scale_wh,
             *, block_batch=4, chunk=8):
    N, _, A = ploc.shape
    C = plabel.shape[1]
    assert chunk % 8 == 0 and A % chunk == 0

    # Pack ploc + gloc along the coordinate axis -> full 8-sublane tiles.
    loc_pg = jnp.concatenate([ploc, gloc], axis=1)              # (N, 8, A)
    glabel3 = glabel.reshape(N, 1, A).astype(jnp.int32)

    bb = max(1, min(block_batch, N))
    n_pad = pl.cdiv(N, bb) * bb
    if n_pad != N:                                              # benign padding
        pad = n_pad - N
        loc_pg = jnp.concatenate(
            [loc_pg, jnp.ones((pad, 8, A), loc_pg.dtype)], axis=0)
        plabel = jnp.concatenate(
            [plabel, jnp.zeros((pad, C, A), plabel.dtype)], axis=0)
        glabel3 = jnp.concatenate(
            [glabel3, jnp.zeros((pad, 1, A), jnp.int32)], axis=0)
    nblk = n_pad // bb

    kernel = functools.partial(
        _ssd_loss_kernel, scale_xy=float(scale_xy), scale_wh=float(scale_wh),
        chunk=chunk)

    per_batch = pl.pallas_call(
        kernel,
        out_shape=jax.ShapeDtypeStruct((nblk, 1, bb), jnp.float32),
        grid=(nblk,),
        in_specs=[
            pl.BlockSpec((bb, 8, A), lambda i: (i, 0, 0)),      # ploc++gloc
            pl.BlockSpec((bb, C, A), lambda i: (i, 0, 0)),      # plabel
            pl.BlockSpec((bb, 1, A), lambda i: (i, 0, 0)),      # glabel
            pl.BlockSpec((1, 4, A), lambda i: (0, 0, 0)),       # dboxes
        ],
        out_specs=pl.BlockSpec((1, 1, bb), lambda i: (i, 0, 0)),
        # Transposed con_neg (anchors on sublanes).  NOTE: lane dim pads to
        # 128 in VMEM; for production A (~8832) shrink block_batch accordingly.
        scratch_shapes=[pltpu.VMEM((bb, A, 1), jnp.float32)],
        compiler_params=pltpu.CompilerParams(
            dimension_semantics=("parallel",),
            vmem_limit_bytes=32 * 1024 * 1024),
    )(loc_pg, plabel, glabel3, dboxes)

    losses = per_batch.reshape(-1)[:N]
    return jnp.mean(losses)          # batch mean (cheap glue in plain JAX)


def ssd_loss_ref(ploc, plabel, gloc, glabel, dboxes, scale_xy, scale_wh):
    """Pure-JAX reference mirroring the PyTorch forward."""
    mask = glabel > 0
    pos_num = jnp.sum(mask, axis=1)
    gxy = scale_xy * (gloc[:, :2, :] - dboxes[:, :2, :]) / dboxes[:, 2:, :]
    gwh = scale_wh * jnp.log(gloc[:, 2:, :] / dboxes[:, 2:, :])
    vec_gd = jnp.concatenate([gxy, gwh], axis=1)
    d = ploc - vec_gd
    ad = jnp.abs(d)
    sl1 = jnp.where(ad < 1.0, 0.5 * d * d, ad - 0.5).sum(axis=1)
    sl1 = (mask.astype(jnp.float32) * sl1).sum(axis=1)
    lse = jax.scipy.special.logsumexp(plabel, axis=1)
    tgt = jnp.take_along_axis(plabel, glabel[:, None, :], axis=1)[:, 0, :]
    con = lse - tgt
    con_neg = jnp.where(mask, 0.0, con)
    con_idx = jnp.argsort(-con_neg, axis=1)       # stable
    con_rank = jnp.argsort(con_idx, axis=1)
    neg_num = jnp.minimum(3 * pos_num, mask.shape[1])[:, None]
    neg_mask = con_rank < neg_num
    closs = (con * (mask.astype(jnp.float32) + neg_mask.astype(jnp.float32))).sum(axis=1)
    total = sl1 + closs
    num_mask = (pos_num > 0).astype(jnp.float32)
    pos = jnp.maximum(pos_num.astype(jnp.float32), 1e-6)
    return jnp.mean(total * num_mask / pos)


if __name__ == "__main__":
    N, C, A = 8, 8, 256          # batch, num classes, num default boxes
    scale_xy = 10.0              # 1 / 0.1
    scale_wh = 5.0               # 1 / 0.2

    key = jax.random.PRNGKey(0)
    k1, k2, k3, k4, k5, k6, k7 = jax.random.split(key, 7)

    # deterministic synthetic "dboxes": (1, 4, A), xywh with w,h > 0
    db_xy = jax.random.uniform(k1, (1, 2, A), jnp.float32, 0.1, 0.9)
    db_wh = jax.random.uniform(k2, (1, 2, A), jnp.float32, 0.1, 0.5)
    dboxes = jnp.concatenate([db_xy, db_wh], axis=1)

    ploc = jax.random.normal(k3, (N, 4, A), jnp.float32)
    plabel = jax.random.normal(k4, (N, C, A), jnp.float32)
    g_xy = jax.random.uniform(k5, (N, 2, A), jnp.float32, 0.1, 0.9)
    g_wh = jax.random.uniform(k6, (N, 2, A), jnp.float32, 0.1, 0.9)
    gloc = jnp.concatenate([g_xy, g_wh], axis=1)
    glabel = jax.random.randint(k7, (N, A), 0, C, dtype=jnp.int32)

    out = jax.block_until_ready(
        ssd_loss(ploc, plabel, gloc, glabel, dboxes, scale_xy, scale_wh))
    ref = jax.block_until_ready(
        ssd_loss_ref(ploc, plabel, gloc, glabel, dboxes, scale_xy, scale_wh))
    np.testing.assert_allclose(np.asarray(out), np.asarray(ref),
                               rtol=1e-5, atol=1e-5)

    print("KERNEL_OK")
</pallas_src>

<mosaic_0001>
module attributes {stable_mosaic.version = 11 : i64} {
  func.func @_ssd_loss_kernel(%arg0: i32, %arg1: memref<4x8x256xf32, #tpu.memory_space<vmem>>, %arg2: memref<4x8x256xf32, #tpu.memory_space<vmem>>, %arg3: memref<4x1x256xi32, #tpu.memory_space<vmem>>, %arg4: memref<1x4x256xf32, #tpu.memory_space<vmem>>, %arg5: memref<1x1x4xf32, #tpu.memory_space<vmem>>, %arg6: memref<4x256x1xf32, #tpu.memory_space<vmem>>) attributes {dimension_semantics = [#tpu.dimension_semantics<parallel>], iteration_bounds = array<i64: 2>, scalar_prefetch = 0 : i64, scratch_operands = 1 : i64, tpu.core_type = #tpu.core_type<tc>, window_params = [{transform_indices = @transform_0, window_bounds = array<i64: 4, 8, 256>}, {transform_indices = @transform_1, window_bounds = array<i64: 4, 8, 256>}, {transform_indices = @transform_2, window_bounds = array<i64: 4, 1, 256>}, {pipeline_mode = #tpu.pipeline_mode<synchronous>, transform_indices = @transform_3, window_bounds = array<i64: 1, 4, 256>}, {transform_indices = @transform_4, window_bounds = array<i64: 1, 1, 4>}]} {
    %c0 = arith.constant 0 : index
    %c0_0 = arith.constant 0 : index
    %c0_1 = arith.constant 0 : index
    %0 = vector.load %arg1[%c0, %c0_0, %c0_1] : memref<4x8x256xf32, #tpu.memory_space<vmem>>, vector<4x8x256xf32>
    %c0_2 = arith.constant 0 : index
    %c0_3 = arith.constant 0 : index
    %c0_4 = arith.constant 0 : index
    %1 = vector.load %arg2[%c0_2, %c0_3, %c0_4] : memref<4x8x256xf32, #tpu.memory_space<vmem>>, vector<4x8x256xf32>
    %c0_5 = arith.constant 0 : index
    %c0_6 = arith.constant 0 : index
    %c0_7 = arith.constant 0 : index
    %2 = vector.load %arg3[%c0_5, %c0_6, %c0_7] : memref<4x1x256xi32, #tpu.memory_space<vmem>>, vector<4x1x256xi32>
    %c0_8 = arith.constant 0 : index
    %c0_9 = arith.constant 0 : index
    %c0_10 = arith.constant 0 : index
    %3 = vector.load %arg4[%c0_8, %c0_9, %c0_10] : memref<1x4x256xf32, #tpu.memory_space<vmem>>, vector<1x4x256xf32>
    %c0_i32 = arith.constant 0 : i32
    %4 = vector.broadcast %c0_i32 : i32 to vector<4x1x256xi32>
    %5 = arith.cmpi sgt, %2, %4 : vector<4x1x256xi32>
    %6 = arith.extui %5 : vector<4x1x256xi1> to vector<4x1x256xi32>
    %7 = arith.sitofp %6 : vector<4x1x256xi32> to vector<4x1x256xf32>
    %cst = arith.constant dense<0.000000e+00> : vector<4x1xf32>
    %8 = vector.multi_reduction <add>, %7, %cst [2] : vector<4x1x256xf32> to vector<4x1xf32>
    %9 = vector.shape_cast %8 : vector<4x1xf32> to vector<4x1x1xf32>
    %10 = vector.extract_strided_slice %3 {offsets = [0, 0, 0], sizes = [1, 2, 256], strides = [1, 1, 1]} : vector<1x4x256xf32> to vector<1x2x256xf32>
    %11 = vector.extract_strided_slice %3 {offsets = [0, 2, 0], sizes = [1, 2, 256], strides = [1, 1, 1]} : vector<1x4x256xf32> to vector<1x2x256xf32>
    %12 = vector.extract_strided_slice %0 {offsets = [0, 4, 0], sizes = [4, 2, 256], strides = [1, 1, 1]} : vector<4x8x256xf32> to vector<4x2x256xf32>
    %13 = vector.broadcast %10 : vector<1x2x256xf32> to vector<4x2x256xf32>
    %14 = arith.subf %12, %13 : vector<4x2x256xf32>
    %cst_11 = arith.constant 1.000000e+01 : f32
    %15 = vector.broadcast %cst_11 : f32 to vector<4x2x256xf32>
    %16 = arith.mulf %15, %14 : vector<4x2x256xf32>
    %17 = vector.broadcast %11 : vector<1x2x256xf32> to vector<4x2x256xf32>
    %18 = arith.divf %16, %17 : vector<4x2x256xf32>
    %19 = vector.extract_strided_slice %0 {offsets = [0, 6, 0], sizes = [4, 2, 256], strides = [1, 1, 1]} : vector<4x8x256xf32> to vector<4x2x256xf32>
    %20 = vector.broadcast %11 : vector<1x2x256xf32> to vector<4x2x256xf32>
    %21 = arith.divf %19, %20 : vector<4x2x256xf32>
    %22 = math.log %21 : vector<4x2x256xf32>
    %cst_12 = arith.constant 5.000000e+00 : f32
    %23 = vector.broadcast %cst_12 : f32 to vector<4x2x256xf32>
    %24 = arith.mulf %23, %22 : vector<4x2x256xf32>
    %25 = vector.extract_strided_slice %0 {offsets = [0, 0, 0], sizes = [4, 2, 256], strides = [1, 1, 1]} : vector<4x8x256xf32> to vector<4x2x256xf32>
    %26 = arith.subf %25, %18 : vector<4x2x256xf32>
    %27 = math.absf %26 : vector<4x2x256xf32>
    %cst_13 = arith.constant 1.000000e+00 : f32
    %28 = vector.broadcast %cst_13 : f32 to vector<4x2x256xf32>
    %29 = arith.cmpf olt, %27, %28 : vector<4x2x256xf32>
    %cst_14 = arith.constant 5.000000e-01 : f32
    %30 = vector.broadcast %cst_14 : f32 to vector<4x2x256xf32>
    %31 = arith.mulf %30, %26 : vector<4x2x256xf32>
    %32 = arith.mulf %31, %26 : vector<4x2x256xf32>
    %cst_15 = arith.constant 5.000000e-01 : f32
    %33 = vector.broadcast %cst_15 : f32 to vector<4x2x256xf32>
    %34 = arith.subf %27, %33 : vector<4x2x256xf32>
    %35 = arith.select %29, %32, %34 : vector<4x2x256xi1>, vector<4x2x256xf32>
    %cst_16 = arith.constant dense<0.000000e+00> : vector<4x256xf32>
    %36 = vector.multi_reduction <add>, %35, %cst_16 [1] : vector<4x2x256xf32> to vector<4x256xf32>
    %37 = vector.shape_cast %36 : vector<4x256xf32> to vector<4x1x256xf32>
    %38 = vector.extract_strided_slice %0 {offsets = [0, 2, 0], sizes = [4, 2, 256], strides = [1, 1, 1]} : vector<4x8x256xf32> to vector<4x2x256xf32>
    %39 = arith.subf %38, %24 : vector<4x2x256xf32>
    %40 = math.absf %39 : vector<4x2x256xf32>
    %cst_17 = arith.constant 1.000000e+00 : f32
    %41 = vector.broadcast %cst_17 : f32 to vector<4x2x256xf32>
    %42 = arith.cmpf olt, %40, %41 : vector<4x2x256xf32>
    %cst_18 = arith.constant 5.000000e-01 : f32
    %43 = vector.broadcast %cst_18 : f32 to vector<4x2x256xf32>
    %44 = arith.mulf %43, %39 : vector<4x2x256xf32>
    %45 = arith.mulf %44, %39 : vector<4x2x256xf32>
    %cst_19 = arith.constant 5.000000e-01 : f32
    %46 = vector.broadcast %cst_19 : f32 to vector<4x2x256xf32>
    %47 = arith.subf %40, %46 : vector<4x2x256xf32>
    %48 = arith.select %42, %45, %47 : vector<4x2x256xi1>, vector<4x2x256xf32>
    %cst_20 = arith.constant dense<0.000000e+00> : vector<4x256xf32>
    %49 = vector.multi_reduction <add>, %48, %cst_20 [1] : vector<4x2x256xf32> to vector<4x256xf32>
    %50 = vector.shape_cast %49 : vector<4x256xf32> to vector<4x1x256xf32>
    %51 = arith.addf %37, %50 : vector<4x1x256xf32>
    %52 = arith.mulf %7, %51 : vector<4x1x256xf32>
    %cst_21 = arith.constant dense<0.000000e+00> : vector<4x1xf32>
    %53 = vector.multi_reduction <add>, %52, %cst_21 [2] : vector<4x1x256xf32> to vector<4x1xf32>
    %54 = vector.shape_cast %53 : vector<4x1xf32> to vector<4x1x1xf32>
    %cst_22 = arith.constant dense<0xFF800000> : vector<4x256xf32>
    %55 = vector.multi_reduction <maximumf>, %1, %cst_22 [1] : vector<4x8x256xf32> to vector<4x256xf32>
    %56 = vector.shape_cast %55 : vector<4x256xf32> to vector<4x1x256xf32>
    %57 = vector.broadcast %56 : vector<4x1x256xf32> to vector<4x8x256xf32>
    %58 = arith.subf %1, %57 : vector<4x8x256xf32>
    %59 = math.exp %58 : vector<4x8x256xf32>
    %cst_23 = arith.constant dense<0.000000e+00> : vector<4x256xf32>
    %60 = vector.multi_reduction <add>, %59, %cst_23 [1] : vector<4x8x256xf32> to vector<4x256xf32>
    %61 = vector.shape_cast %60 : vector<4x256xf32> to vector<4x1x256xf32>
    %62 = math.log %61 : vector<4x1x256xf32>
    %63 = arith.addf %62, %56 : vector<4x1x256xf32>
    %64 = tpu.iota {dimensions = array<i32: 1>} : vector<4x8x256xi32>
    %65 = vector.broadcast %2 : vector<4x1x256xi32> to vector<4x8x256xi32>
    %66 = arith.cmpi eq, %64, %65 : vector<4x8x256xi32>
    %cst_24 = arith.constant 0.000000e+00 : f32
    %67 = vector.broadcast %cst_24 : f32 to vector<4x8x256xf32>
    %68 = arith.select %66, %1, %67 : vector<4x8x256xi1>, vector<4x8x256xf32>
    %cst_25 = arith.constant dense<0.000000e+00> : vector<4x256xf32>
    %69 = vector.multi_reduction <add>, %68, %cst_25 [1] : vector<4x8x256xf32> to vector<4x256xf32>
    %70 = vector.shape_cast %69 : vector<4x256xf32> to vector<4x1x256xf32>
    %71 = arith.subf %63, %70 : vector<4x1x256xf32>
    %cst_26 = arith.constant 0.000000e+00 : f32
    %72 = vector.broadcast %cst_26 : f32 to vector<4x1x256xf32>
    %73 = arith.select %5, %72, %71 : vector<4x1x256xi1>, vector<4x1x256xf32>
    %74 = vector.extract_strided_slice %73 {offsets = [0, 0, 0], sizes = [1, 1, 256], strides = [1, 1, 1]} : vector<4x1x256xf32> to vector<1x1x256xf32>
    %75 = vector.shape_cast %74 : vector<1x1x256xf32> to vector<1x256xf32>
    %76 = tpu.transpose %75, [1, 0] : vector<1x256xf32> -> vector<256x1xf32>
    %c0_27 = arith.constant 0 : index
    %c0_28 = arith.constant 0 : index
    %c0_29 = arith.constant 0 : index
    %77 = vector.load %arg6[%c0_27, %c0_28, %c0_29] : memref<4x256x1xf32, #tpu.memory_space<vmem>>, vector<1x256x1xf32>
    %78 = vector.shape_cast %77 : vector<1x256x1xf32> to vector<256x1xf32>
    %79 = vector.shape_cast %76 : vector<256x1xf32> to vector<1x256x1xf32>
    tpu.vector_store %arg6[%c0_27, %c0_28, %c0_29], %79 {strides = array<i32>} : memref<4x256x1xf32, #tpu.memory_space<vmem>>, vector<1x256x1xf32>,
    %80 = vector.extract_strided_slice %73 {offsets = [1, 0, 0], sizes = [1, 1, 256], strides = [1, 1, 1]} : vector<4x1x256xf32> to vector<1x1x256xf32>
    %81 = vector.shape_cast %80 : vector<1x1x256xf32> to vector<1x256xf32>
    %82 = tpu.transpose %81, [1, 0] : vector<1x256xf32> -> vector<256x1xf32>
    %c1 = arith.constant 1 : index
    %c0_30 = arith.constant 0 : index
    %c0_31 = arith.constant 0 : index
    %83 = vector.load %arg6[%c1, %c0_30, %c0_31] : memref<4x256x1xf32, #tpu.memory_space<vmem>>, vector<1x256x1xf32>
    %84 = vector.shape_cast %83 : vector<1x256x1xf32> to vector<256x1xf32>
    %85 = vector.shape_cast %82 : vector<256x1xf32> to vector<1x256x1xf32>
    tpu.vector_store %arg6[%c1, %c0_30, %c0_31], %85 {strides = array<i32>} : memref<4x256x1xf32, #tpu.memory_space<vmem>>, vector<1x256x1xf32>,
    %86 = vector.extract_strided_slice %73 {offsets = [2, 0, 0], sizes = [1, 1, 256], strides = [1, 1, 1]} : vector<4x1x256xf32> to vector<1x1x256xf32>
    %87 = vector.shape_cast %86 : vector<1x1x256xf32> to vector<1x256xf32>
    %88 = tpu.transpose %87, [1, 0] : vector<1x256xf32> -> vector<256x1xf32>
    %c2 = arith.constant 2 : index
    %c0_32 = arith.constant 0 : index
    %c0_33 = arith.constant 0 : index
    %89 = vector.load %arg6[%c2, %c0_32, %c0_33] : memref<4x256x1xf32, #tpu.memory_space<vmem>>, vector<1x256x1xf32>
    %90 = vector.shape_cast %89 : vector<1x256x1xf32> to vector<256x1xf32>
    %91 = vector.shape_cast %88 : vector<256x1xf32> to vector<1x256x1xf32>
    tpu.vector_store %arg6[%c2, %c0_32, %c0_33], %91 {strides = array<i32>} : memref<4x256x1xf32, #tpu.memory_space<vmem>>, vector<1x256x1xf32>,
    %92 = vector.extract_strided_slice %73 {offsets = [3, 0, 0], sizes = [1, 1, 256], strides = [1, 1, 1]} : vector<4x1x256xf32> to vector<1x1x256xf32>
    %93 = vector.shape_cast %92 : vector<1x1x256xf32> to vector<1x256xf32>
    %94 = tpu.transpose %93, [1, 0] : vector<1x256xf32> -> vector<256x1xf32>
    %c3 = arith.constant 3 : index
    %c0_34 = arith.constant 0 : index
    %c0_35 = arith.constant 0 : index
    %95 = vector.load %arg6[%c3, %c0_34, %c0_35] : memref<4x256x1xf32, #tpu.memory_space<vmem>>, vector<1x256x1xf32>
    %96 = vector.shape_cast %95 : vector<1x256x1xf32> to vector<256x1xf32>
    %97 = vector.shape_cast %94 : vector<256x1xf32> to vector<1x256x1xf32>
    tpu.vector_store %arg6[%c3, %c0_34, %c0_35], %97 {strides = array<i32>} : memref<4x256x1xf32, #tpu.memory_space<vmem>>, vector<1x256x1xf32>,
    %98 = tpu.iota {dimensions = array<i32: 2>} : vector<1x1x256xi32>
    %cst_36 = arith.constant 0.000000e+00 : f32
    %99 = vector.broadcast %cst_36 : f32 to vector<4x8x256xf32>
    %c0_i32_37 = arith.constant 0 : i32
    %c32_i32 = arith.constant 32 : i32
    %100 = arith.addi %c0_i32_37, %c32_i32 : i32
    %c1_i32 = arith.constant 1 : i32
    %101 = scf.for %arg7 = %c0_i32_37 to %100 step %c1_i32 iter_args(%arg8 = %99) -> (vector<4x8x256xf32>)  : i32 {
      %c8_i32 = arith.constant 8 : i32
      %137 = arith.muli %arg7, %c8_i32 : i32
      %138 = tpu.assume_multiple %137, 8 : i32
      %c0_49 = arith.constant 0 : index
      %139 = arith.index_cast %138 : i32 to index
      %c0_50 = arith.constant 0 : index
      %140 = vector.load %arg6[%c0_49, %139, %c0_50] : memref<4x256x1xf32, #tpu.memory_space<vmem>>, vector<4x8x1xf32>
      %141 = tpu.iota {dimensions = array<i32: 1>} : vector<1x8x1xi32>
      %142 = vector.broadcast %138 : i32 to vector<1x8x1xi32>
      %143 = arith.addi %141, %142 : vector<1x8x1xi32>
      %144 = vector.broadcast %140 : vector<4x8x1xf32> to vector<4x8x256xf32>
      %145 = vector.broadcast %73 : vector<4x1x256xf32> to vector<4x8x256xf32>
      %146 = arith.cmpf ogt, %144, %145 : vector<4x8x256xf32>
      %147 = vector.broadcast %140 : vector<4x8x1xf32> to vector<4x8x256xf32>
      %148 = vector.broadcast %73 : vector<4x1x256xf32> to vector<4x8x256xf32>
      %149 = arith.cmpf oeq, %147, %148 : vector<4x8x256xf32>
      %150 = vector.broadcast %143 : vector<1x8x1xi32> to vector<1x8x256xi32>
      %151 = vector.broadcast %98 : vector<1x1x256xi32> to vector<1x8x256xi32>
      %152 = arith.cmpi slt, %150, %151 : vector<1x8x256xi32>
      %153 = vector.broadcast %152 : vector<1x8x256xi1> to vector<4x8x256xi1>
      %154 = arith.andi %149, %153 : vector<4x8x256xi1>
      %155 = arith.ori %146, %154 : vector<4x8x256xi1>
      %156 = arith.extui %155 : vector<4x8x256xi1> to vector<4x8x256xi32>
      %157 = arith.sitofp %156 : vector<4x8x256xi32> to vector<4x8x256xf32>
      %158 = arith.addf %arg8, %157 : vector<4x8x256xf32>
      scf.yield %158 : vector<4x8x256xf32>
    }
    %c32_i32_38 = arith.constant 32 : i32
    %cst_39 = arith.constant dense<0.000000e+00> : vector<4x256xf32>
    %102 = vector.multi_reduction <add>, %101, %cst_39 [1] : vector<4x8x256xf32> to vector<4x256xf32>
    %103 = vector.shape_cast %102 : vector<4x256xf32> to vector<4x1x256xf32>
    %cst_40 = arith.constant 3.000000e+00 : f32
    %104 = vector.broadcast %cst_40 : f32 to vector<4x1x1xf32>
    %105 = arith.mulf %104, %9 : vector<4x1x1xf32>
    %cst_41 = arith.constant 2.560000e+02 : f32
    %106 = vector.broadcast %cst_41 : f32 to vector<4x1x1xf32>
    %107 = arith.minimumf %105, %106 : vector<4x1x1xf32>
    %108 = vector.broadcast %107 : vector<4x1x1xf32> to vector<4x1x256xf32>
    %109 = arith.cmpf olt, %103, %108 : vector<4x1x256xf32>
    %110 = arith.extui %109 : vector<4x1x256xi1> to vector<4x1x256xi32>
    %111 = arith.sitofp %110 : vector<4x1x256xi32> to vector<4x1x256xf32>
    %112 = arith.addf %7, %111 : vector<4x1x256xf32>
    %113 = arith.mulf %71, %112 : vector<4x1x256xf32>
    %cst_42 = arith.constant dense<0.000000e+00> : vector<4x1xf32>
    %114 = vector.multi_reduction <add>, %113, %cst_42 [2] : vector<4x1x256xf32> to vector<4x1xf32>
    %115 = vector.shape_cast %114 : vector<4x1xf32> to vector<4x1x1xf32>
    %116 = arith.addf %54, %115 : vector<4x1x1xf32>
    %cst_43 = arith.constant 0.000000e+00 : f32
    %117 = vector.broadcast %cst_43 : f32 to vector<4x1x1xf32>
    %118 = arith.cmpf ogt, %9, %117 : vector<4x1x1xf32>
    %119 = arith.extui %118 : vector<4x1x1xi1> to vector<4x1x1xi32>
    %120 = arith.sitofp %119 : vector<4x1x1xi32> to vector<4x1x1xf32>
    %cst_44 = arith.constant 9.99999997E-7 : f32
    %121 = vector.broadcast %cst_44 : f32 to vector<4x1x1xf32>
    %122 = arith.maximumf %9, %121 : vector<4x1x1xf32>
    %123 = arith.mulf %116, %120 : vector<4x1x1xf32>
    %124 = arith.divf %123, %122 : vector<4x1x1xf32>
    %125 = tpu.iota {dimensions = array<i32: 2>} : vector<1x1x4xi32>
    %126 = tpu.iota {dimensions = array<i32: 0>} : vector<4x1x1xi32>
    %127 = vector.broadcast %125 : vector<1x1x4xi32> to vector<4x1x4xi32>
    %128 = vector.broadcast %126 : vector<4x1x1xi32> to vector<4x1x4xi32>
    %129 = arith.cmpi eq, %127, %128 : vector<4x1x4xi32>
    %130 = arith.extui %129 : vector<4x1x4xi1> to vector<4x1x4xi32>
    %131 = arith.sitofp %130 : vector<4x1x4xi32> to vector<4x1x4xf32>
    %132 = vector.broadcast %124 : vector<4x1x1xf32> to vector<4x1x4xf32>
    %133 = arith.mulf %132, %131 : vector<4x1x4xf32>
    %cst_45 = arith.constant dense<0.000000e+00> : vector<1x4xf32>
    %134 = vector.multi_reduction <add>, %133, %cst_45 [0] : vector<4x1x4xf32> to vector<1x4xf32>
    %135 = vector.shape_cast %134 : vector<1x4xf32> to vector<1x1x4xf32>
    %c0_46 = arith.constant 0 : index
    %c0_47 = arith.constant 0 : index
    %c0_48 = arith.constant 0 : index
    %136 = vector.load %arg5[%c0_46, %c0_47, %c0_48] : memref<1x1x4xf32, #tpu.memory_space<vmem>>, vector<1x1x4xf32>
    tpu.vector_store %arg5[%c0_46, %c0_47, %c0_48], %135 {strides = array<i32>} : memref<1x1x4xf32, #tpu.memory_space<vmem>>, vector<1x1x4xf32>,
    return
  }
  func.func @transform_0(%arg0: i32) -> (i32, i32, i32) {
    %c0_i32 = arith.constant 0 : i32
    %c0_i32_0 = arith.constant 0 : i32
    %c0_i32_1 = arith.constant 0 : i32
    return %arg0, %c0_i32, %c0_i32_0 : i32, i32, i32
  }
  func.func @transform_1(%arg0: i32) -> (i32, i32, i32) {
    %c0_i32 = arith.constant 0 : i32
    %c0_i32_0 = arith.constant 0 : i32
    %c0_i32_1 = arith.constant 0 : i32
    return %arg0, %c0_i32, %c0_i32_0 : i32, i32, i32
  }
  func.func @transform_2(%arg0: i32) -> (i32, i32, i32) {
    %c0_i32 = arith.constant 0 : i32
    %c0_i32_0 = arith.constant 0 : i32
    %c0_i32_1 = arith.constant 0 : i32
    return %arg0, %c0_i32, %c0_i32_0 : i32, i32, i32
  }
  func.func @transform_3(%arg0: i32) -> (i32, i32, i32) {
    %c0_i32 = arith.constant 0 : i32
    %c0_i32_0 = arith.constant 0 : i32
    %c0_i32_1 = arith.constant 0 : i32
    %c0_i32_2 = arith.constant 0 : i32
    return %c0_i32, %c0_i32_0, %c0_i32_1 : i32, i32, i32
  }
  func.func @transform_4(%arg0: i32) -> (i32, i32, i32) {
    %c0_i32 = arith.constant 0 : i32
    %c0_i32_0 = arith.constant 0 : i32
    %c0_i32_1 = arith.constant 0 : i32
    return %arg0, %c0_i32, %c0_i32_0 : i32, i32, i32
  }
}

</mosaic_0001>

<bundles_post_ra>
// kernel: tpu_custom_call.1
= control target key start
LH: loop header
LB: loop body
LE: loop exit
PB: predicated region body
PF: predicated region fallthrough
CT: control target
= control target key end

     0   :  { %s4001_s0 = inlined_call_operand.hbm [shape: f32[8,8,256], index: 0, kind: input, shape index: {}]   ;;  %s4002_s1 = inlined_call_operand.hbm [shape: f32[8,8,256], index: 1, kind: input, shape index: {}]   ;;  %s4003_s2 = inlined_call_operand.hbm [shape: s32[8,1,256], index: 2, kind: input, shape index: {}]   ;;  %s4004_s3 = inlined_call_operand.hbm [shape: f32[1,4,256], index: 3, kind: input, shape index: {}]   ;;  %s4005_s4 = inlined_call_operand.hbm [shape: f32[2,1,4], index: 4, kind: output, shape index: {}]  }
   0x1   :  { %4034 = sst [smem:[#allocation31_spill]] %s4002_s1 }
   0x2   :  { %9 = vsyncpa [#allocation4], 0 }
   0x3   :  { %11 = vsyncpa [#allocation4 + $0x1], 0 }
   0x4   :  { %12 = vsyncpa [#allocation7], 0 }
   0x5   :  { %14 = vsyncpa [#allocation7 + $0x1], 0 }
   0x6   :  { %15 = vsyncpa [#allocation10], 0 }
   0x7   :  { %16 = vsyncpa [#allocation5], 0 }
   0x8   :  { %18 = vsyncpa [#allocation5 + $0x1], 0  ;;  %s2819_s15 = smov 0   ;;  %s2821_s16 = smov 0  }
   0x9   :  { %s2823_s17 = smov 0   ;;  %s2825_s18 = smov 0  }
   0xa LB: > { %s2840_s19 = sadd.s32 1, %s2743_s18   ;;  %s31_s20 = sadd.s32 1, %s2739_s17  ;;  %s2743_s18 = sphi %s2825_s18, %s4146_s18   ;;  %s2739_s17 = sphi %s2823_s17, %s4145_s17   ;;  %s2735_s16 = sphi %s2821_s16, %s4144_s16   ;;  %s2731_s15 = sphi %s2819_s15, %s4143_s15  }
   0xb   : > { %s28_s21 = ssub.s32 %s2743_s18, %s2840_s19  ;;  %p4006_p0 = scmp.ne.s32.totalorder %s2739_s17, %s2735_s16 }
   0xc   : > { %p29_p1 = scmp.eq.s32.totalorder %s28_s21, 0  ;;  %p39_p2 = scmp.eq.s32.totalorder %s2743_s18, 0 }
   0xd   : > { %p2341_p4 = scmp.lt.s32.totalorder %s2743_s18, 2  ;;  %s2857_s23 = sand.u32 1, %s2739_s17  }
   0xe   : > { %s2851_s22 = scalar_select %p29_p1, %s2739_s17, %s31_s20  }
   0xf   : > { %p40_p5 = por %p39_p2, %p4006_p0  ;;  %s2239_s24 = sshll.u32 %s2857_s23, 6 }
  0x10   : > { %4035 = sst [smem:[#allocation16_spill]] %s2851_s22  ;;  %s2305_s25 = sshll.u32 %s2743_s18, 10 }
  0x11   : > { %p2861_p6 = pnand %p2341_p4, %p40_p5  ;;  %s200_s27 = sand.u32 1, %s2743_s18  }
  0x12   : > { %s4037_s1 = sld [smem:[#allocation31_spill]]  ;;  %s204_s5 = scalar_lea.vmem [#allocation6], %s2239_s24 }
  0x13   : > { %s212_s6 = sshll.u32 %s204_s5, 4  ;;  %s2877_s7 = scalar_lea.sflag [#allocation7], %s200_s27  ;;  %s2875_s6 = int_to_ptr.vmem [resolvable:$true] %s212_s6 }
  0x14   : > { %p2883_p8 = pneg %p2861_p6 }
  0x18   : > { %s2871_s30 = scalar_lea.hbm %s4037_s1, %s2305_s25  ;;  %s2530_s12 = scalar_lea.hbm %s4037_s1, 2048 }
  0x19   : > { %s2525_s8 = scalar_lea.hbm %s2871_s30, 1024  ;;  %p2531_p11 = scmp.lt.s32.totalorder %s2871_s30, %s4037_s1 }
  0x1a   : > { %p2526_p7 = scmp.ne.s32.totalorder %s2871_s30, %s2525_s8  ;;  %p2532_p12 = scmp.lt.s32.totalorder %s2530_s12, %s2525_s8 }
  0x1c   : > { %p2528_p9 = pnand %p2883_p8, %p2526_p7  ;;  %p2533_p13 = por %p2532_p12, %p2531_p11 }
  0x1e   : > { %p2529_p10 = pneg %p2528_p9 }
  0x20   : > { %p2534_p1 = pnand %p2533_p13, %p2529_p10 }
  0x22   : > { %2537 = shalt.err (!%p2534_p1)
}
  0x23   : > { %s2538_s20 = scalar_lea.vmem %s2875_s6, 1024  ;;  %s2781_s21 = smov [#allocation6]  }
  0x24   : > { %p2539_p2 = scmp.ne.s32.totalorder %s2875_s6, %s2538_s20  ;;  %s2543_s27 = sshll.u32 %s2781_s21, 4  ;;  %s2544_s27 = int_to_ptr.vmem [resolvable:$false] %s2543_s27 }
  0x25   : > { %s2545_s28 = scalar_lea.vmem %s2544_s27, 2048  ;;  %p2546_p7 = scmp.lt.s32.totalorder %s2875_s6, %s2544_s27 }
  0x26   : > { %p2541_p4 = pnand %p2539_p2, %p2883_p8  ;;  %p2547_p9 = scmp.lt.s32.totalorder %s2545_s28, %s2538_s20 }
  0x28   : > { %p2542_p5 = pneg %p2541_p4  ;;  %p2548_p3 = por %p2547_p9, %p2546_p7 }
  0x2a   : > { %p2549_p0 = pnand %p2548_p3, %p2542_p5 }
  0x2c   : > { %2552 = shalt.err (!%p2549_p0)
}
  0x2d   : > { %s4007_s29 = smov 256   ;;  %s4008_s5 = smov 16  }
  0x2e   : > { %2332 = dma.hbm_to_vmem [thread:$0]  (!%p2861_p6), %s2871_s30, 1024, %s2875_s6, %s2877_s7, %s4007_s29, %s4007_s29, %s4008_s5  }
  0x2f   : > { %s2910_s8 = sadd.s32 4294967295, %s2743_s18   ;;  %s2235_s10 = sadd.s32 4294967294, %s2743_s18  }
  0x30   : > { %p44_p0 = scmp.ne.s32.totalorder %s2735_s16, %s2731_s15  ;;  %p4009_p3 = scmp.eq.s32.totalorder %s2910_s8, 0 }
  0x31   : > { %p141_p10 = scmp.eq.s32.totalorder %s2910_s8, 1  ;;  %p147_p11 = scmp.eq.s32.totalorder %s2235_s10, 1 }
  0x32   : > { %p2919_p12 = por %p4009_p3, %p44_p0  ;;  %p2236_p13 = scmp.ge.s32.totalorder %s2743_s18, 1 }
  0x33   : > { %p4040_p1 = scmp.ne.s32.totalorder %s2739_s17, %s2735_s16  ;;  %p2931_p4 = por %p147_p11, %p44_p0 }
  0x34   : > { %s4039_s11 = scalar_select %p2919_p12, 1, 0 }
  0x35   : > { %p2927_p2 = por %p141_p10, %p4040_p1  ;;  %p154_p5 = scmp.lt.s32.totalorder %s2743_s18, 3 }
  0x36   : > { %s4042_s6 = scalar_select %p2931_p4, 1, 0 }
  0x37   : > { %s4041_s30 = scalar_select %p2927_p2, 1, 0 }
  0x38   : > { %p2936_p7 = pnand %p2236_p13, %p154_p5  ;;  %s2784_s13 = smov [#allocation9]  }
  0x39   : > { %s167_s14 = sshll.u32 %s2784_s13, 4  ;;  %s2949_s27 = scalar_lea.hbm %s4001_s0, %s2305_s25  ;;  %s2940_s14 = int_to_ptr.vmem [resolvable:$true] %s167_s14 }
  0x3a   : > { %s4043_s12 = scalar_select %p2936_p7, 1, 0 }
  0x3b   : > { %p2322_p9 = pneg %p2936_p7  ;;  %s182_s28 = scalar_lea.vmem [#allocation3], %s2239_s24 }
  0x3c   : > { %s190_s10 = sshll.u32 %s182_s28, 4  ;;  %s179_s5 = scalar_lea.sflag [#allocation4], %s2857_s23  ;;  %s2960_s10 = int_to_ptr.vmem [resolvable:$true] %s190_s10 }
  0x3d   : > { %p2956_p0 = pnand %p2322_p9, %p4009_p3  ;;  %s2553_s1 = scalar_lea.hbm %s2949_s27, 1024 }
  0x3e   : > { %p2554_p10 = scmp.ne.s32.totalorder %s2949_s27, %s2553_s1  ;;  %s2558_s21 = scalar_lea.hbm %s4001_s0, 2048 }
  0x3f   : > { %s4044_s13 = scalar_select %p2956_p0, 1, 0 }
  0x40   : > { %p2556_p11 = pnand %p2554_p10, %p2883_p8  ;;  %p2559_p1 = scmp.lt.s32.totalorder %s2949_s27, %s4001_s0 }
  0x41   : > { %p2560_p5 = scmp.lt.s32.totalorder %s2558_s21, %s2553_s1 }
  0x42   : > { %p2557_p13 = pneg %p2556_p11 }
  0x43   : > { %p2561_p9 = por %p2560_p5, %p2559_p1 }
  0x45   : > { %p2562_p3 = pnand %p2561_p9, %p2557_p13 }
  0x47   : > { %2565 = shalt.err (!%p2562_p3)
}
  0x48   : > { %s2566_s29 = scalar_lea.vmem %s2960_s10, 1024  ;;  %s2785_s22 = smov [#allocation3]  }
  0x49   : > { %p2567_p4 = scmp.ne.s32.totalorder %s2960_s10, %s2566_s29  ;;  %s2571_s25 = sshll.u32 %s2785_s22, 4  ;;  %s2572_s25 = int_to_ptr.vmem [resolvable:$false] %s2571_s25 }
  0x4a   : > { %s2573_s20 = scalar_lea.vmem %s2572_s25, 2048  ;;  %p2574_p2 = scmp.lt.s32.totalorder %s2960_s10, %s2572_s25 }
  0x4b   : > { %p2569_p10 = pnand %p2567_p4, %p2883_p8  ;;  %p2575_p12 = scmp.lt.s32.totalorder %s2573_s20, %s2566_s29 }
  0x4d   : > { %p2570_p11 = pneg %p2569_p10  ;;  %p2576_p7 = por %p2575_p12, %p2574_p2 }
  0x4f   : > { %p2577_p0 = pnand %p2576_p7, %p2570_p11 }
  0x51   : > { %2580 = shalt.err (!%p2577_p0)
}
  0x52   : > { %s4045_s1 = smov 16   ;;  %s4046_s21 = smov 256  }
  0x53   : > { %2329 = dma.hbm_to_vmem [thread:$0]  (!%p2861_p6), %s2949_s27, 1024, %s2960_s10, %s179_s5, %s4046_s21, %s4046_s21, %s4045_s1  }
  0x54   : > { %p4047_p3 = scmp.ne.s32.totalorder %s4044_s13, 0  ;;  %s2592_s22 = scalar_lea.vmem %s2940_s14, 128 }
  0x55   : > { %p2593_p13 = scmp.ne.s32.totalorder %s2940_s14, %s2592_s22  ;;  %p2600_p2 = scmp.lt.s32.totalorder %s2940_s14, %s2940_s14 }
  0x56   : > { %p2583_p4 = pneg %p4047_p3  ;;  %p2601_p7 = scmp.lt.s32.totalorder %s2592_s22, %s2592_s22 }
  0x58   : > { %p2595_p1 = pnand %p2593_p13, %p2583_p4  ;;  %p2602_p0 = por %p2601_p7, %p2600_p2 }
  0x5a   : > { %p2596_p12 = pneg %p2595_p1 }
  0x5c   : > { %p2603_p5 = pnand %p2602_p0, %p2596_p12 }
  0x5e   : > { %2606 = shalt.err (!%p2603_p5)
}
  0x5f   : > { %2325 = dma.hbm_to_vmem [thread:$0]  (!%p4047_p3), %s4004_s3, 128, %s2940_s14, [#allocation10]  }
  0x60   : > { %s2309_s5 = sshll.u32 %s2743_s18, 7  ;;  %s4048_s27 = sshll.u32 %s2857_s23, 3 }
  0x61   : > { %s226_s10 = scalar_lea.vmem [#allocation8], %s4048_s27  ;;  %s3004_s1 = scalar_lea.hbm %s4003_s2, %s2309_s5 }
  0x62   : > { %s234_s28 = sshll.u32 %s226_s10, 4  ;;  %s2607_s13 = scalar_lea.hbm %s3004_s1, 128  ;;  %s3006_s28 = int_to_ptr.vmem [resolvable:$true] %s234_s28 }
  0x63   : > { %p2608_p9 = scmp.ne.s32.totalorder %s3004_s1, %s2607_s13  ;;  %s2612_s23 = scalar_lea.hbm %s4003_s2, 256 }
  0x64   : > { %p2613_p3 = scmp.lt.s32.totalorder %s3004_s1, %s4003_s2  ;;  %p2614_p4 = scmp.lt.s32.totalorder %s2612_s23, %s2607_s13 }
  0x65   : > { %p2610_p10 = pnand %p2608_p9, %p2883_p8 }
  0x66   : > { %p2615_p13 = por %p2614_p4, %p2613_p3 }
  0x67   : > { %p2611_p11 = pneg %p2610_p10 }
  0x69   : > { %p2616_p1 = pnand %p2615_p13, %p2611_p11 }
  0x6b   : > { %2619 = shalt.err (!%p2616_p1)
}
  0x6c   : > { %s2620_s24 = scalar_lea.vmem %s3006_s28, 128  ;;  %s2786_s5 = smov [#allocation8]  }
  0x6d   : > { %p2621_p12 = scmp.ne.s32.totalorder %s3006_s28, %s2620_s24  ;;  %s2625_s27 = sshll.u32 %s2786_s5, 4  ;;  %s2626_s27 = int_to_ptr.vmem [resolvable:$false] %s2625_s27 }
  0x6e   : > { %s2627_s10 = scalar_lea.vmem %s2626_s27, 256  ;;  %p2628_p0 = scmp.lt.s32.totalorder %s3006_s28, %s2626_s27 }
  0x6f   : > { %p2623_p2 = pnand %p2621_p12, %p2883_p8  ;;  %p2629_p5 = scmp.lt.s32.totalorder %s2627_s10, %s2620_s24 }
  0x71   : > { %p2624_p7 = pneg %p2623_p2  ;;  %p2630_p9 = por %p2629_p5, %p2628_p0 }
  0x73   : > { %p2631_p10 = pnand %p2630_p9, %p2624_p7 }
  0x75   : > { %2634 = shalt.err (!%p2631_p10)
}
  0x76   : > { %s2787_s25 = smov 32   ;;  %s2788_s20 = smov 2  }
  0x77   : > { %2335 = dma.hbm_to_vmem [thread:$0]  (!%p2861_p6), %s3004_s1, 128, %s3006_s28, %s2877_s7, %s2787_s25, %s2787_s25, %s2788_s20  }
  0x78   : > { %p4049_p8 = scmp.ne.s32.totalorder %s4043_s12, 0 }
  0x7a   : > { %246 = sbr.rel (%p4049_p8) target bundleno = 1037 (0x40d), region = 36 }
  0x7f   : > { %s3032_s9 = sand.u32 1, %s2735_s16   ;;  %p4050_p11 = scmp.ne.s32.totalorder %s4039_s11, 0 }
  0x80   : > { %s2252_s13 = sshll.u32 %s3032_s9, 6  ;;  %s249_s14 = scalar_lea.sflag [#allocation4], %s3032_s9 }
  0x81   : > { %s3036_s21 = scalar_lea.vmem [#allocation3], %s2252_s13 }
  0x82   : > { %2714 = dma.done.wait (%p4050_p11), %s249_s14, 1024  }
  0x83   : > { %2716 = vsyncadd (%p4050_p11), %s249_s14, 4294966272  ;;  %s257_s26 = sand.u32 1, %s2910_s8   ;;  %s3043_s12 = scalar_lea.vmem [#allocation6], %s2252_s13 }
  0x84   : > { %s258_s7 = scalar_lea.sflag [#allocation7], %s257_s26 }
  0x85   : > { %2718 = dma.done.wait (%p4050_p11), %s258_s7, 1152  }
  0x86   : > { %2720 = vsyncadd (%p4050_p11), %s258_s7, 4294966144  ;;  %s2254_s28 = sshll.u32 %s3032_s9, 3  ;;  %p4051_p6 = scmp.eq.s32.totalorder %s2910_s8, 0 }
  0x87   : > { %s3050_s1 = scalar_lea.vmem [#allocation8], %s2254_s28 }
  0x88   : > { %2722 = dma.done.wait (%p4051_p6), [#allocation10], 128   ;;  %p4052_p3 = pmov %p4051_p6 }
  0x89   : > { %v348_v0 = vlaneseq  ;;  %v3070_v6 = vld [vmem:[%s3050_s1 + $0x4] sm:$0x3]  ;;  %v3078_v9 = vld [vmem:[%s3050_s1 + $0x6] sm:$0x3]  ;;  %v4014_v10 = vmov 0.0   ;;  %vm388_vm1 = vcmask 1040384  }
  0x8a   : > { %2724 = vsyncadd (%p4052_p3), [#allocation10], 4294967168  ;;  %4056 = vst [vmem:[#allocation20_spill] sm:$0xff] %v3070_v6  ;;  %vm334_vm0 = vcmp.gt.s32.totalorder %v3070_v6, 0  ;;  %vm335_vm2 = vcmp.gt.s32.totalorder %v3078_v9, 0  ;;  %v4062_v24 = vmov 0 }
  0x8b   : > { %v3056_v1 = vshrl.u32 %v348_v0, 7  ;;  %v3058_v2 = vand.u32 127, %v348_v0  ;;  %4057 = vst [vmem:[#allocation21_spill] sm:$0xff] %v3078_v9  ;;  %v3083_v11 = vsel %vm334_vm0, 1.0, %v4014_v10  ;;  %v3105_v17 = vsel %vm335_vm2, 1.0, %v4014_v10  ;;  %v319_v36 = vld [vmem:[%s3043_s12] sm:$0xff] }
  0x8c   : > { %v4065_v25 = vmov 0  ;;  %v3126_v26 = vld [vmem:[%s3050_s1] sm:$0x3]  ;;  %v3132_v30 = vld [vmem:[%s3050_s1 + $0x2] sm:$0x3]  ;;  %v922_v45 = vrot.slane %v319_v36, 4 }
  0x8d   : > { %4053 = vst [vmem:[#allocation17_spill] sm:$0xff] %v3056_v1  ;;  %4054 = vst [vmem:[#allocation18_spill] sm:$0xff] %v3058_v2  ;;  %v3061_v3 = vadd.s32 128, %v3058_v2  ;;  %v3064_v4 = vsub.s32 0, %v3056_v1  ;;  %v3067_v5 = vsub.s32 1, %v3056_v1  ;;  %vm332_vm7 = vcmp.gt.s32.totalorder %v3126_v26, 0 }
  0x8e   : > { %4068 = vst [vmem:[#allocation24_spill] sm:$0xff] %v3132_v30  ;;  %v3137_v31 = vsel %vm332_vm7, 1.0, %v4014_v10  ;;  %vm333_vm8 = vcmp.gt.s32.totalorder %v3132_v30, 0  ;;  %v320_v37 = vld [vmem:[%s3043_s12 + $0x8] sm:$0xff]  ;;  %v923_v51 = vmax.f32 %v319_v36, %v922_v45  ;;  %v3178_v62 = vld [vmem:[#allocation9] sm:$0xff]  ;;  %vm557_vm13 = vcmask 1041408  }
  0x8f   : > { %4055 = vst [vmem:[#allocation19_spill] sm:$0xff] %v3061_v3  ;;  %v1087_v7 = vrot.slane %v3070_v6, %v3064_v4  ;;  %v1091_v8 = vrot.slane %v3070_v6, %v3067_v5  ;;  %v1095_v12 = vrot.slane %v3078_v9, %v3064_v4  ;;  %v367_v13 = vrot.slane %v3083_v11, %v3064_v4  ;;  %s307_s11 = scalar_lea.vmem [#allocation11], %s3032_s9  ;;  %s3800_s23 = smov 0  }
  0x90   : > { %v371_v14 = vrot.slane %v3083_v11, %v3067_v5  ;;  %v1099_v18 = vrot.slane %v3078_v9, %v3067_v5  ;;  %v375_v22 = vrot.slane %v3105_v17, %v3064_v4  ;;  %v379_v23 = vrot.slane %v3105_v17, %v3067_v5 }
  0x91   : > { %vm3093_vm3 = vcmp.eq.s32.totalorder %v3056_v1, %v1087_v7  ;;  %vm3098_vm4 = vcmp.eq.s32.totalorder %v3056_v1, %v1091_v8  ;;  %v399_v19 = vsel %vm388_vm1, %v367_v13, 0.0  ;;  %vm3116_vm5 = vcmp.eq.s32.totalorder %v3056_v1, %v1095_v12 }
  0x92   : > { %v400_v20 = vsel %vm388_vm1, %v371_v14, 0.0  ;;  %v4063_v24 = vsel %vm3116_vm5, 4294967295, %v4062_v24  ;;  %vm3121_vm6 = vcmp.eq.s32.totalorder %v3056_v1, %v1099_v18  ;;  %v404_v27 = vsel %vm388_vm1, %v375_v22, 0.0 }
  0x93   : > { %v401_v21 = vadd.f32 %v400_v20, %v399_v19  ;;  %4064 = vst [vmem:[#allocation22_spill] sm:$0xff] %v4063_v24  ;;  %v4066_v25 = vsel %vm3121_vm6, 4294967295, %v4065_v25  ;;  %v405_v28 = vsel %vm388_vm1, %v379_v23, 0.0  ;;  %v351_v32 = vrot.slane %v3137_v31, %v3064_v4 }
  0x94   : > { %4067 = vst [vmem:[#allocation23_spill] sm:$0xff] %v4066_v25  ;;  %v406_v29 = vadd.f32 %v405_v28, %v404_v27  ;;  %v355_v33 = vrot.slane %v3137_v31, %v3067_v5  ;;  %v3151_v39 = vsel %vm333_vm8, 1.0, %v4014_v10  ;;  %v1079_v40 = vrot.slane %v3132_v30, %v3064_v4 }
  0x95   : > { %402 = vadd.xlane.f32.xlu1 %v401_v21  ;;  %v389_v34 = vsel %vm388_vm1, %v351_v32, 0.0  ;;  %v359_v41 = vrot.slane %v3151_v39, %v3064_v4  ;;  %v363_v42 = vrot.slane %v3151_v39, %v3067_v5  ;;  %v1083_v43 = vrot.slane %v3132_v30, %v3067_v5 }
  0x96   : > { %v390_v35 = vsel %vm388_vm1, %v355_v33, 0.0  ;;  %vm3162_vm9 = vcmp.eq.s32.totalorder %v3056_v1, %v1079_v40  ;;  %v928_v46 = vrot.slane %v320_v37, 4  ;;  %v924_v53 = vrot.slane %v923_v51, 2 }
  0x97   : > { %v391_v38 = vadd.f32 %v390_v35, %v389_v34  ;;  %v394_v47 = vsel %vm388_vm1, %v359_v41, 0.0  ;;  %v395_v48 = vsel %vm388_vm1, %v363_v42, 0.0  ;;  %vm3169_vm10 = vcmp.eq.s32.totalorder %v3056_v1, %v1083_v43 }
  0x98   : > { %v396_v50 = vadd.f32 %v395_v48, %v394_v47  ;;  %v929_v52 = vmax.f32 %v320_v37, %v928_v46  ;;  %v925_v55 = vmax.f32 %v923_v51, %v924_v53  ;;  %v3183_v8 = vcombine.low %v3178_v62, %v3178_v62 }
  0x99   : > { %407 = vadd.xlane.f32.xlu1 %v406_v29  ;;  %392 = vadd.xlane.f32.xlu0 %v391_v38  ;;  %v428_v12 = vcombine.high %v3178_v62, %v3178_v62  ;;  %v429_v13 = vrot.slane %v3178_v62, 6  ;;  %v1071_v18 = vrot.slane %v3126_v26, %v3064_v4  ;;  %v1075_v19 = vrot.slane %v3126_v26, %v3067_v5  ;;  %v3199_v29 = vld [vmem:[%s3036_s21 + $0x10] sm:$0xff]  ;;  %v3204_v38 = vld [vmem:[%s3036_s21 + $0x18] sm:$0xff] }
  0x9a   : > { %v930_v54 = vrot.slane %v929_v52, 2  ;;  %v926_v57 = vrot.slane %v925_v55, 1  ;;  %v414_v41 = vsub.f32 %v3199_v29, %v3183_v8  ;;  %v415_v43 = vsub.f32 %v3204_v38, %v3178_v62 }
  0x9b   : > { %v430_v14 = vrot.slane %v428_v12, 6  ;;  %vm1100_vm11 = vcmp.eq.s32.totalorder %v3056_v1, %v1071_v18  ;;  %vm1101_vm12 = vcmp.eq.s32.totalorder %v3056_v1, %v1075_v19 }
  0x9c   : > { %v931_v56 = vmax.f32 %v929_v52, %v930_v54  ;;  %v3173_v59 = vmax.f32 %v925_v55, %v926_v57  ;;  %v1108_v33 = vsel %vm1100_vm11, %v319_v36, 0.0  ;;  %v1109_v34 = vsel %vm1101_vm12, %v320_v37, 0.0 }
  0x9d   : > { %397 = vadd.xlane.f32.xlu0 %v396_v50  ;;  %v1116_v46 = vrot.slane %v1108_v33, 4  ;;  %v1122_v47 = vrot.slane %v1109_v34, 4  ;;  %v422_v53 = vmul.f32 10.0, %v414_v41 }
  0x9e   : > { %v932_v58 = vrot.slane %v931_v56, 1  ;;  %v970_v61 = vsub.f32 %v319_v36, %v3173_v59 }
  0xa0   : > { %v3175_v60 = vmax.f32 %v931_v56, %v932_v58  ;;  %v978_v0 = vmul.f32 1.442695, %v970_v61  ;;  %v423_v56 = vmul.f32 10.0, %v415_v43  ;;  %v1117_v58 = vadd.f32 %v1116_v46, %v1108_v33 }
  0xa1   : > { %v1123_v61 = vadd.f32 %v1122_v47, %v1109_v34 }
  0xa2   : > { %v971_v63 = vsub.f32 %v320_v37, %v3175_v60  ;;  %2459 = vpow2.f32 %v978_v0  ;;  %v3215_v37 = vld [vmem:[%s3036_s21 + $0x30] sm:$0xff]  ;;  %v1118_v19 = vrot.slane %v1117_v58, 2 }
  0xa3   : > { %v418_v51 = vsub.f32 %v3215_v37, %v3183_v8 }
  0xa4   : > { %v980_v7 = vmul.f32 1.442695, %v971_v63 }
  0xa5   : > { %v426_v12 = vmul.f32 10.0, %v418_v51 }
  0xa6   : > { %2461 = vpow2.f32 %v980_v7  ;;  %v3224_v7 = vld [vmem:[%s3036_s21 + $0x38] sm:$0xff] }
  0xa7   : > { %2463 = vrcp.f32 %v3183_v8 }
  0xa8   : > { %2465 = vrcp.f32 %v3178_v62 }
  0xa9   : > { %2467 = vrcp.f32 %v429_v13 }
  0xaa   : > { %2469 = vrcp.f32 %v430_v14  ;;  %v419_v14 = vsub.f32 %v3224_v7, %v3178_v62 }
  0xac   : > { %v427_v33 = vmul.f32 10.0, %v419_v14 }
  0xaf   : > { %v2460_v20 = vpop.eup %2459 }
  0xb0   : > { %v994_v22 = vrot.slane %v2460_v20, 4 }
  0xb2   : > { %v995_v28 = vadd.f32 %v2460_v20, %v994_v22  ;;  %v1124_v20 = vrot.slane %v1123_v61, 2 }
  0xb3   : > { %v2462_v21 = vpop.eup %2461 }
  0xb4   : > { %v1000_v23 = vrot.slane %v2462_v21, 4  ;;  %v3196_v27 = vpop.eup %2463  ;;  %v996_v40 = vrot.slane %v995_v28, 2  ;;  %v1125_v41 = vadd.f32 %v1124_v20, %v1123_v61 }
  0xb5   : > { %v3201_v32 = vpop.eup %2465  ;;  %v447_v45 = vmul.f32 %v3196_v27, %v3199_v29  ;;  %v451_v34 = vmul.f32 %v3196_v27, %v3215_v37 }
  0xb6   : > { %v1001_v35 = vadd.f32 %v2462_v21, %v1000_v23  ;;  %v997_v48 = vadd.f32 %v996_v40, %v995_v28  ;;  %v448_v36 = vmul.f32 %v3201_v32, %v3204_v38  ;;  %v3219_v54 = vpop.eup %2467  ;;  %v2790_v21 = vmov 1966171168  }
  0xb7   : > { %2471 = vlog2.f32 %v447_v45  ;;  %v3221_v57 = vpop.eup %2469  ;;  %v437_v13 = vmul.f32 %v3219_v54, %v422_v53  ;;  %v792_v22 = vunpack.c.l.s4 %v2790_v21  ;;  %v441_v23 = vmul.f32 %v3219_v54, %v426_v12 }
  0xb8   : > { %v1002_v42 = vrot.slane %v1001_v35, 2  ;;  %v998_v52 = vrot.slane %v997_v48, 1  ;;  %2473 = vlog2.f32 %v448_v36  ;;  %v438_v18 = vmul.f32 %v3221_v57, %v423_v56 }
  0xb9   : > { %v487_v28 = vrot.slane %v437_v13, 4  ;;  %v1119_v40 = vadd.f32 %v1118_v19, %v1117_v58  ;;  %v491_v43 = vrot.slane %v441_v23, 4  ;;  %v442_v46 = vmul.f32 %v3221_v57, %v427_v33 }
  0xba   : > { %v1003_v50 = vadd.f32 %v1002_v42, %v1001_v35  ;;  %v999_v63 = vadd.f32 %v998_v52, %v997_v48  ;;  %v488_v35 = vrot.slane %v438_v18, 4  ;;  %v793_v42 = vunpack.c.0.s8 %v792_v22 }
  0xbb   : > { %v503_v45 = vsub.f32 %v3199_v29, %v487_v28  ;;  %v452_v47 = vmul.f32 %v3201_v32, %v3224_v7  ;;  %v1120_v51 = vrot.slane %v1119_v40, 1  ;;  %v1126_v52 = vrot.slane %v1125_v41, 1 }
  0xbc   : > { %v1004_v55 = vrot.slane %v1003_v50, 1  ;;  %2475 = vlog2.f32 %v999_v63  ;;  %v504_v48 = vsub.f32 %v3204_v38, %v488_v35  ;;  %v507_v56 = vsub.f32 %v3215_v37, %v491_v43 }
  0xbd   : > { %v511_v58 = vand.u32 2147483647, %v503_v45  ;;  %v527_v61 = vmul.f32 0.5, %v503_v45  ;;  %v492_v63 = vrot.slane %v442_v46, 4  ;;  %v1121_v21 = vadd.f32 %v1120_v51, %v1119_v40 }
  0xbe   : > { %v1005_v0 = vadd.f32 %v1004_v55, %v1003_v50  ;;  %v3239_v50 = vld [vmem:[%s3043_s12 + $0x20] sm:$0xff]  ;;  %v3242_v55 = vsub.s32 %v793_v42, %v3056_v1  ;;  %v512_v14 = vand.u32 2147483647, %v504_v48  ;;  %v528_v18 = vmul.f32 0.5, %v504_v48 }
  0xbf   : > { %v1127_v22 = vadd.f32 %v1126_v52, %v1125_v41  ;;  %v515_v33 = vand.u32 2147483647, %v507_v56  ;;  %v535_v42 = vmul.f32 %v527_v61, %v503_v45  ;;  %v2262_v43 = vadd.f32 -0.5, %v511_v58  ;;  %v3253_v41 = vld [vmem:[%s3036_s21 + $0x8] sm:$0xff] }
  0xc0   : > { %2477 = vlog2.f32 %v1005_v0  ;;  %v508_v46 = vsub.f32 %v3224_v7, %v492_v63  ;;  %v536_v40 = vmul.f32 %v528_v18, %v504_v48  ;;  %v2263_v51 = vadd.f32 -0.5, %v512_v14  ;;  %v3266_v45 = vld [vmem:[%s3043_s12 + $0x28] sm:$0xff] }
  0xc1   : > { %2479 = vlog2.f32 %v451_v34  ;;  %v531_v34 = vmul.f32 0.5, %v507_v56  ;;  %vm3257_vm14 = vcmp.lt.f32.partialorder %v511_v58, 1.0  ;;  %vm3261_vm15 = vcmp.lt.f32.partialorder %v512_v14, 1.0 }
  0xc2   : > { %2481 = vlog2.f32 %v452_v47  ;;  %v3249_v47 = vld [vmem:[%s3036_s21] sm:$0xff]  ;;  %v2266_v61 = vadd.f32 -0.5, %v515_v33  ;;  %vm3272_vm11 = vcmp.lt.f32.partialorder %v515_v33, 1.0  ;;  %v532_v18 = vmul.f32 0.5, %v508_v46 }
  0xc3   : > { %v539_v48 = vmul.f32 %v531_v34, %v507_v56  ;;  %v444_v63 = vmul.f32 %v3196_v27, %v3249_v47  ;;  %v446_v14 = vmul.f32 %v3201_v32, %v3253_v41  ;;  %v551_v56 = vsel %vm3257_vm14, %v535_v42, %v2262_v43 }
  0xc4   : > { %v2472_v36 = vpop.eup %2471  ;;  %v3291_v34 = vsel %vm3093_vm3, %v3239_v50, 0.0  ;;  %v572_v15 = vsel %vm557_vm13, %v551_v56, 0.0 }
  0xc5   : > { %v2474_v53 = vpop.eup %2473  ;;  %v458_v13 = vmul.f32 0.6931472, %v2472_v36  ;;  %2483 = vlog2.f32 %v444_v63  ;;  %v573_v63 = vrot.slane %v572_v15, 4 }
  0xc6   : > { %v460_v23 = vmul.f32 0.6931472, %v2474_v53  ;;  %2485 = vlog2.f32 %v446_v14  ;;  %v3322_v14 = vld [vmem:[%s3036_s21 + $0x20] sm:$0xff] }
  0xc8   : > { %v472_v53 = vmul.f32 5.0, %v460_v23  ;;  %v552_v23 = vsel %vm3261_vm15, %v536_v40, %v2263_v51 }
  0xc9   : > { %v2476_v0 = vpop.eup %2475  ;;  %v579_v40 = vsel %vm557_vm13, %v552_v23, 0.0 }
  0xca   : > { %v1043_v20 = vmul.f32 0.6931472, %v2476_v0  ;;  %v471_v0 = vmul.f32 5.0, %v458_v13  ;;  %v516_v13 = vand.u32 2147483647, %v508_v46  ;;  %v625_v10 = vrot.slane %v472_v53, 4 }
  0xcc   : > { %v1058_v35 = vadd.f32 %v1043_v20, %v3173_v59  ;;  %v2267_v49 = vadd.f32 -0.5, %v516_v13  ;;  %vm3310_vm3 = vcmp.lt.f32.partialorder %v516_v13, 1.0 }
  0xcd   : > { %v2478_v19 = vpop.eup %2477 }
  0xce   : > { %v1045_v28 = vmul.f32 0.6931472, %v2478_v19  ;;  %v3255_v52 = vsub.f32 %v1058_v35, %v1121_v21  ;;  %v2480_v20 = vpop.eup %2479  ;;  %v3279_v21 = vld [vmem:[%s3043_s12 + $0x10] sm:$0xff]  ;;  %v3294_v35 = vld [vmem:[%s3043_s12 + $0x18] sm:$0xff]  ;;  %v540_v19 = vmul.f32 %v532_v18, %v508_v46  ;;  %v580_v18 = vrot.slane %v579_v40, 4 }
  0xcf   : > { %v1111_v42 = vsel %vm3169_vm10, %v3294_v35, 0.0  ;;  %v466_v51 = vmul.f32 0.6931472, %v2480_v20  ;;  %v2482_v44 = vpop.eup %2481 }
  0xd0   : > { %v1059_v36 = vadd.f32 %v1045_v28, %v3175_v60  ;;  %4073 = vst [vmem:[#allocation25_spill] sm:$0xff] %v3255_v52  ;;  %v624_v28 = vrot.slane %v471_v0, 4  ;;  %v555_v0 = vsel %vm3272_vm11, %v539_v48, %v2266_v61  ;;  %v412_v61 = vsub.f32 %v3249_v47, %v3183_v8 }
  0xd1   : > { %v600_v48 = vsel %vm557_vm13, %v555_v0, 0.0  ;;  %v468_v13 = vmul.f32 0.6931472, %v2482_v44  ;;  %v475_v20 = vmul.f32 5.0, %v466_v51  ;;  %v556_v26 = vsel %vm3310_vm3, %v540_v19, %v2267_v49 }
  0xd2   : > { %v3268_v60 = vsub.f32 %v1059_v36, %v1127_v22  ;;  %v1110_v36 = vsel %vm3162_vm9, %v3279_v21, 0.0  ;;  %v640_v59 = vsub.f32 %v3199_v29, %v624_v28  ;;  %v413_v29 = vsub.f32 %v3253_v41, %v3178_v62 }
  0xd3   : > { %v601_v28 = vrot.slane %v600_v48, 4  ;;  %v1134_v33 = vrot.slane %v1111_v42, 4  ;;  %v574_v44 = vadd.f32 %v573_v63, %v572_v15  ;;  %v581_v12 = vadd.f32 %v580_v18, %v579_v40 }
  0xd4   : > { %4078 = vst [vmem:[#allocation26_spill] sm:$0xff] %v3268_v60  ;;  %v1180_v22 = vcombine.low %v3255_v52, %v3268_v60  ;;  %v648_v56 = vand.u32 2147483647, %v640_v59  ;;  %v664_v23 = vmul.f32 0.5, %v640_v59  ;;  %v420_v51 = vmul.f32 10.0, %v412_v61  ;;  %v3337_v60 = vld [vmem:[%s3036_s21 + $0x28] sm:$0xff] }
  0xd5   : > { %v476_v52 = vmul.f32 5.0, %v468_v13  ;;  %v607_v19 = vsel %vm557_vm13, %v556_v26, 0.0  ;;  %v628_v49 = vrot.slane %v475_v20, 4  ;;  %v421_v58 = vmul.f32 10.0, %v413_v29  ;;  %v2484_v29 = vpop.eup %2483 }
  0xd6   : > { %v1187_v43 = vrot.slane %v1180_v22, %v3242_v55  ;;  %v641_v22 = vsub.f32 %v3204_v38, %v625_v10  ;;  %v2270_v3 = vadd.f32 -0.5, %v648_v56  ;;  %v602_v2 = vadd.f32 %v601_v28, %v600_v48  ;;  %v2486_v26 = vpop.eup %2485 }
  0xd7   : > { %v450_v15 = vmul.f32 %v3201_v32, %v3337_v60  ;;  %v575_v40 = vrot.slane %v574_v44, 2  ;;  %v582_v61 = vrot.slane %v581_v12, 2  ;;  %v608_v18 = vrot.slane %v607_v19, 4 }
  0xd8   : > { %v1194_v53 = vrot.slane %v1187_v43, %v3242_v55  ;;  %v1128_v43 = vrot.slane %v1110_v36, 4  ;;  %v649_v0 = vand.u32 2147483647, %v641_v22  ;;  %v629_v13 = vrot.slane %v476_v52, 4 }
  0xd9   : > { %v644_v20 = vsub.f32 %v3215_v37, %v628_v49  ;;  %v576_v52 = vadd.f32 %v575_v40, %v574_v44  ;;  %v454_v28 = vmul.f32 0.6931472, %v2484_v29 }
  0xda   : > { %v1244_v46 = vsel %vm332_vm7, 0.0, %v1194_v53  ;;  %v665_v53 = vmul.f32 0.5, %v641_v22  ;;  %vm3340_vm7 = vcmp.lt.f32.partialorder %v648_v56, 1.0  ;;  %vm3346_vm9 = vcmp.lt.f32.partialorder %v649_v0, 1.0 }
  0xdb   : > { %v3325_v10 = vrot.slane %v1244_v46, %v3067_v5  ;;  %v3328_v38 = vrot.slane %v1244_v46, %v3064_v4  ;;  %v449_v46 = vmul.f32 %v3196_v27, %v3322_v14  ;;  %v2271_v27 = vadd.f32 -0.5, %v649_v0 }
  0xdc   : > { %v673_v1 = vmul.f32 %v665_v53, %v641_v22  ;;  %v3355_v48 = vadd.f32 %v1128_v43, %v1110_v36  ;;  %v3357_v22 = vadd.f32 %v1134_v33, %v1111_v42  ;;  %v416_v56 = vsub.f32 %v3322_v14, %v3183_v8 }
  0xdd   : > { %4083 = vst [vmem:[#allocation27_spill] sm:$0xff] %v3325_v10  ;;  %4084 = vst [vmem:[#allocation28_spill] sm:$0xff] %v3328_v38  ;;  %1291 = vxpose.xlu1.b32.start.end [1/1] (short) %v3325_v10, 128  ;;  %1259 = vxpose.xlu0.b32.start.end [1/1] (short) %v3328_v38, 128  ;;  %v672_v38 = vmul.f32 %v664_v23, %v640_v59  ;;  %2487 = vlog2.f32 %v449_v46  ;;  %v3353_v59 = vsel %vm3098_vm4, %v3266_v45, 0.0  ;;  %v603_v36 = vrot.slane %v602_v2, 2 }
  0xde   : > { %v417_v23 = vsub.f32 %v3337_v60, %v3178_v62  ;;  %v689_v16 = vsel %vm3346_vm9, %v673_v1, %v2271_v27  ;;  %v434_v33 = vmul.f32 %v3219_v54, %v420_v51  ;;  %2489 = vlog2.f32 %v450_v15 }
  0xdf   : > { %v688_v32 = vsel %vm3340_vm7, %v672_v38, %v2270_v3  ;;  %v583_v42 = vadd.f32 %v582_v61, %v581_v12  ;;  %v609_v10 = vadd.f32 %v608_v18, %v607_v19  ;;  %v436_v3 = vmul.f32 %v3221_v57, %v421_v58 }
  0xe0   : > { %v704_v38 = vrot.slane %v688_v32, 2  ;;  %v645_v8 = vsub.f32 %v3224_v7, %v629_v13  ;;  %v705_v62 = vrot.slane %v689_v16, 2  ;;  %v652_v43 = vand.u32 2147483647, %v644_v20 }
  0xe1   : > { %v668_v0 = vmul.f32 0.5, %v644_v20  ;;  %v456_v53 = vmul.f32 0.6931472, %v2486_v26  ;;  %v604_v1 = vadd.f32 %v603_v36, %v602_v2  ;;  %v485_v46 = vrot.slane %v434_v33, 4 }
  0xe2   : > { %v424_v49 = vmul.f32 10.0, %v416_v56  ;;  %v425_v51 = vmul.f32 10.0, %v417_v23  ;;  %v577_v27 = vrot.slane %v576_v52, 1  ;;  %v584_v44 = vrot.slane %v583_v42, 1 }
  0xe3   : > { %v610_v12 = vrot.slane %v609_v10, 2  ;;  %v486_v19 = vrot.slane %v436_v3, 4  ;;  %v732_v58 = vsel %vm557_vm13, %v704_v38, 0.0  ;;  %v653_v15 = vand.u32 2147483647, %v645_v8 }
  0xe4   : > { %v669_v40 = vmul.f32 0.5, %v645_v8  ;;  %v469_v61 = vmul.f32 5.0, %v454_v28  ;;  %v739_v7 = vsel %vm557_vm13, %v705_v62, 0.0  ;;  %v676_v63 = vmul.f32 %v668_v0, %v644_v20 }
  0xe5   : > { %v2274_v18 = vadd.f32 -0.5, %v652_v43  ;;  %v470_v29 = vmul.f32 5.0, %v456_v53  ;;  %v605_v13 = vrot.slane %v604_v1, 1  ;;  %vm3374_vm4 = vcmp.lt.f32.partialorder %v652_v43, 1.0 }
  0xe6   : > { %v501_v32 = vsub.f32 %v3249_v47, %v485_v46  ;;  %v439_v56 = vmul.f32 %v3219_v54, %v424_v49  ;;  %v3380_v26 = vadd.f32 %v577_v27, %v576_v52  ;;  %v3382_v16 = vadd.f32 %v584_v44, %v583_v42 }
  0xe7   : > { %v733_v36 = vrot.slane %v732_v58, 4  ;;  %v611_v33 = vadd.f32 %v610_v12, %v609_v10  ;;  %v740_v3 = vrot.slane %v739_v7, 4  ;;  %v677_v20 = vmul.f32 %v669_v40, %v645_v8 }
  0xe8   : > { %v2275_v38 = vadd.f32 -0.5, %v653_v15  ;;  %v622_v28 = vrot.slane %v469_v61, 4  ;;  %v692_v62 = vsel %vm3374_vm4, %v676_v63, %v2274_v18  ;;  %v502_v43 = vsub.f32 %v3253_v41, %v486_v19 }
  0xe9   : > { %v623_v0 = vrot.slane %v470_v29, 4  ;;  %v3387_v46 = vadd.f32 %v605_v13, %v604_v1  ;;  %vm3389_vm10 = vcmp.lt.f32.partialorder %v653_v15, 1.0  ;;  %v934_v52 = vrot.slane %v3279_v21, 4 }
  0xea   : > { %v2488_v23 = vpop.eup %2487  ;;  %v940_v42 = vrot.slane %v3294_v35, 4  ;;  %v3395_v8 = vadd.f32 %v733_v36, %v732_v58  ;;  %v612_v49 = vrot.slane %v611_v33, 1  ;;  %v509_v27 = vand.u32 2147483647, %v501_v32 }
  0xeb   : > { %v462_v53 = vmul.f32 0.6931472, %v2488_v23  ;;  %v2490_v10 = vpop.eup %2489  ;;  %v525_v44 = vmul.f32 0.5, %v501_v32  ;;  %v3397_v12 = vadd.f32 %v740_v3, %v739_v7  ;;  %v708_v19 = vrot.slane %v692_v62, 2 }
  0xec   : > { %v638_v1 = vsub.f32 %v3249_v47, %v622_v28  ;;  %v464_v40 = vmul.f32 0.6931472, %v2490_v10  ;;  %v693_v15 = vsel %vm3389_vm10, %v677_v20, %v2275_v38  ;;  %v510_v61 = vand.u32 2147483647, %v502_v43 }
  0xed   : > { %v639_v63 = vsub.f32 %v3253_v41, %v623_v0  ;;  %v473_v18 = vmul.f32 5.0, %v462_v53  ;;  %v526_v29 = vmul.f32 0.5, %v502_v43  ;;  %v935_v58 = vmax.f32 %v3279_v21, %v934_v52 }
  0xee   : > { %v474_v13 = vmul.f32 5.0, %v464_v40  ;;  %v941_v2 = vmax.f32 %v3294_v35, %v940_v42  ;;  %vm3405_vm12 = vcmp.lt.f32.partialorder %v509_v27, 1.0  ;;  %v533_v23 = vmul.f32 %v525_v44, %v501_v32 }
  0xef   : > { %v2260_v47 = vadd.f32 -0.5, %v509_v27  ;;  %v440_v36 = vmul.f32 %v3221_v57, %v425_v51  ;;  %v646_v3 = vand.u32 2147483647, %v638_v1  ;;  %v662_v20 = vmul.f32 0.5, %v638_v1 }
  0xf0   : > { %v489_v38 = vrot.slane %v439_v56, 4  ;;  %v936_v28 = vrot.slane %v935_v58, 2  ;;  %v647_v41 = vand.u32 2147483647, %v639_v63  ;;  %v663_v62 = vmul.f32 0.5, %v639_v63 }
  0xf1   : > { %v626_v0 = vrot.slane %v473_v18, 4  ;;  %v942_v53 = vrot.slane %v941_v2, 2  ;;  %v709_v54 = vrot.slane %v693_v15, 2  ;;  %vm3410_vm14 = vcmp.lt.f32.partialorder %v510_v61, 1.0 }
  0xf2   : > { %v534_v42 = vmul.f32 %v526_v29, %v502_v43  ;;  %v627_v10 = vrot.slane %v474_v13, 4  ;;  %v2261_v40 = vadd.f32 -0.5, %v510_v61  ;;  %v549_v32 = vsel %vm3405_vm12, %v533_v23, %v2260_v47 }
  0xf3   : > { %v490_v57 = vrot.slane %v440_v36, 4  ;;  %v937_v51 = vmax.f32 %v935_v58, %v936_v28  ;;  %vm3416_vm15 = vcmp.lt.f32.partialorder %v646_v3, 1.0  ;;  %v670_v27 = vmul.f32 %v662_v20, %v638_v1 }
  0xf4   : > { %v2268_v44 = vadd.f32 -0.5, %v646_v3  ;;  %v943_v18 = vmax.f32 %v941_v2, %v942_v53  ;;  %v671_v15 = vmul.f32 %v663_v62, %v639_v63  ;;  %v2269_v37 = vadd.f32 -0.5, %v647_v41 }
  0xf5   : > { %v505_v9 = vsub.f32 %v3322_v14, %v489_v38  ;;  %v642_v43 = vsub.f32 %v3322_v14, %v626_v0  ;;  %v3422_v29 = vadd.f32 %v612_v49, %v611_v33  ;;  %vm3424_vm11 = vcmp.lt.f32.partialorder %v647_v41, 1.0 }
  0xf6   : > { %v643_v13 = vsub.f32 %v3337_v60, %v627_v10  ;;  %v938_v58 = vrot.slane %v937_v51, 1  ;;  %v3430_v7 = vsel %vm557_vm13, %v708_v19, 0.0  ;;  %v3433_v1 = vsel %vm557_vm13, %v709_v54, 0.0 }
  0xf7   : > { %v3436_v63 = vsel %vm557_vm13, %v549_v32, 0.0  ;;  %v506_v14 = vsub.f32 %v3337_v60, %v490_v57  ;;  %v550_v33 = vsel %vm3410_vm14, %v534_v42, %v2261_v40  ;;  %v686_v49 = vsel %vm3416_vm15, %v670_v27, %v2268_v44 }
  0xf8   : > { %v3443_v2 = vmax.f32 %v937_v51, %v938_v58  ;;  %v944_v23 = vrot.slane %v943_v18, 1  ;;  %v687_v19 = vsel %vm3424_vm11, %v671_v15, %v2269_v37  ;;  %v529_v47 = vmul.f32 0.5, %v505_v9 }
  0xf9   : > { %v650_v36 = vand.u32 2147483647, %v642_v43  ;;  %v666_v3 = vmul.f32 0.5, %v642_v43  ;;  %v651_v20 = vand.u32 2147483647, %v643_v13  ;;  %v667_v38 = vmul.f32 0.5, %v643_v13 }
  0xfa   : > { %v3447_v28 = vmax.f32 %v943_v18, %v944_v23  ;;  %v972_v60 = vsub.f32 %v3279_v21, %v3443_v2  ;;  %v565_v41 = vsel %vm557_vm13, %v550_v33, 0.0  ;;  %v702_v62 = vrot.slane %v686_v49, 2 }
  0xfb   : > { %v513_v0 = vand.u32 2147483647, %v505_v9  ;;  %v514_v53 = vand.u32 2147483647, %v506_v14  ;;  %v703_v54 = vrot.slane %v687_v19, 2  ;;  %v530_v52 = vmul.f32 0.5, %v506_v14 }
  0xfc   : > { %v973_v37 = vsub.f32 %v3294_v35, %v3447_v28  ;;  %v982_v42 = vmul.f32 1.442695, %v972_v60  ;;  %v537_v10 = vmul.f32 %v529_v47, %v505_v9  ;;  %v674_v40 = vmul.f32 %v666_v3, %v642_v43 }
  0xfd   : > { %v2272_v32 = vadd.f32 -0.5, %v650_v36  ;;  %v4101_v57 = vrot.slane %v3239_v50, 4  ;;  %v675_v56 = vmul.f32 %v667_v38, %v643_v13  ;;  %v2273_v21 = vadd.f32 -0.5, %v651_v20 }
  0xfe   : > { %2491 = vpow2.f32 %v982_v42  ;;  %v984_v27 = vmul.f32 1.442695, %v973_v37  ;;  %vm3457_vm3 = vcmp.lt.f32.partialorder %v650_v36, 1.0  ;;  %vm3461_vm7 = vcmp.lt.f32.partialorder %v651_v20, 1.0 }
  0xff   : > { %v947_v51 = vmax.f32 %v3239_v50, %v4101_v57  ;;  %v4106_v9 = vrot.slane %v3266_v45, 4  ;;  %v538_v43 = vmul.f32 %v530_v52, %v506_v14  ;;  %v2264_v61 = vadd.f32 -0.5, %v513_v0 }
 0x100   : > { %v2265_v58 = vadd.f32 -0.5, %v514_v53  ;;  %2493 = vpow2.f32 %v984_v27  ;;  %vm3468_vm9 = vcmp.lt.f32.partialorder %v513_v0, 1.0  ;;  %vm3472_vm4 = vcmp.lt.f32.partialorder %v514_v53, 1.0 }
 0x101   : > { %v948_v35 = vrot.slane %v947_v51, 2  ;;  %v953_v15 = vmax.f32 %v3266_v45, %v4106_v9  ;;  %v761_v19 = vrot.slane %v3430_v7, 4  ;;  %v768_v47 = vrot.slane %v3433_v1, 4 }
 0x102   : > { %v690_v14 = vsel %vm3457_vm3, %v674_v40, %v2272_v32  ;;  %v691_v36 = vsel %vm3461_vm7, %v675_v56, %v2273_v21  ;;  %v718_v3 = vsel %vm557_vm13, %v702_v62, 0.0  ;;  %v725_v20 = vsel %vm557_vm13, %v703_v54, 0.0 }
 0x103   : > { %v949_v49 = vmax.f32 %v947_v51, %v948_v35  ;;  %v954_v23 = vrot.slane %v953_v15, 2  ;;  %v559_v0 = vrot.slane %v3436_v63, 4  ;;  %v566_v53 = vrot.slane %v565_v41, 4 }
 0x104   : > { %v553_v52 = vsel %vm3468_vm9, %v537_v10, %v2264_v61  ;;  %v554_v37 = vsel %vm3472_vm4, %v538_v43, %v2265_v58  ;;  %v706_v42 = vrot.slane %v690_v14, 2  ;;  %v707_v40 = vrot.slane %v691_v36, 2 }
 0x105   : > { %v950_v38 = vrot.slane %v949_v49, 1  ;;  %v955_v60 = vmax.f32 %v953_v15, %v954_v23  ;;  %v735_v62 = vrot.slane %v3395_v8, 2  ;;  %v742_v54 = vrot.slane %v3397_v12, 2 }
 0x106   : > { %v719_v51 = vrot.slane %v718_v3, 4  ;;  %v726_v56 = vrot.slane %v725_v20, 4  ;;  %v762_v21 = vadd.f32 %v761_v19, %v3430_v7  ;;  %v769_v27 = vadd.f32 %v768_v47, %v3433_v1 }
 0x107   : > { %v3489_v32 = vmax.f32 %v949_v49, %v950_v38  ;;  %v956_v57 = vrot.slane %v955_v60, 1  ;;  %v560_v18 = vadd.f32 %v559_v0, %v3436_v63  ;;  %v567_v35 = vadd.f32 %v566_v53, %v565_v41 }
 0x108   : > { %v586_v9 = vsel %vm557_vm13, %v553_v52, 0.0  ;;  %v593_v15 = vsel %vm557_vm13, %v554_v37, 0.0  ;;  %v746_v43 = vsel %vm557_vm13, %v706_v42, 0.0  ;;  %v753_v61 = vsel %vm557_vm13, %v707_v40, 0.0 }
 0x109   : > { %v3495_v44 = vmax.f32 %v955_v60, %v956_v57  ;;  %v974_v10 = vsub.f32 %v3239_v50, %v3489_v32  ;;  %v736_v58 = vadd.f32 %v735_v62, %v3395_v8  ;;  %v743_v13 = vadd.f32 %v742_v54, %v3397_v12 }
 0x10a   : > { %v720_v50 = vadd.f32 %v719_v51, %v718_v3  ;;  %v727_v33 = vadd.f32 %v726_v56, %v725_v20  ;;  %v587_v41 = vrot.slane %v586_v9, 4  ;;  %v594_v49 = vrot.slane %v593_v15, 4 }
 0x10b   : > { %4111 = vst [vmem:[#allocation29_spill] sm:$0xff] %v3495_v44  ;;  %v975_v7 = vsub.f32 %v3266_v45, %v3495_v44  ;;  %v986_v1 = vmul.f32 1.442695, %v974_v10  ;;  %v2492_v63 = vpop.eup %2491  ;;  %v763_v19 = vrot.slane %v762_v21, 2  ;;  %v747_v47 = vrot.slane %v746_v43, 4 }
 0x10c   : > { %v754_v14 = vrot.slane %v753_v61, 4  ;;  %v1006_v36 = vrot.slane %v2492_v63, 4  ;;  %v770_v60 = vrot.slane %v769_v27, 2  ;;  %v561_v0 = vrot.slane %v560_v18, 2 }
 0x10d   : > { %2495 = vpow2.f32 %v986_v1  ;;  %v988_v23 = vmul.f32 1.442695, %v975_v7  ;;  %v2494_v38 = vpop.eup %2493  ;;  %v568_v45 = vrot.slane %v567_v35, 2  ;;  %v721_v8 = vrot.slane %v720_v50, 2 }
 0x10e   : > { %v728_v12 = vrot.slane %v727_v33, 2  ;;  %v1007_v3 = vadd.f32 %v2492_v63, %v1006_v36  ;;  %v1012_v20 = vrot.slane %v2494_v38, 4  ;;  %v737_v52 = vrot.slane %v736_v58, 1 }
 0x10f   : > { %2497 = vpow2.f32 %v988_v23  ;;  %v744_v37 = vrot.slane %v743_v13, 1  ;;  %v588_v42 = vadd.f32 %v587_v41, %v586_v9  ;;  %v595_v40 = vadd.f32 %v594_v49, %v593_v15 }
 0x110   : > { %v748_v57 = vadd.f32 %v747_v47, %v746_v43  ;;  %v755_v62 = vadd.f32 %v754_v14, %v753_v61  ;;  %v1008_v54 = vrot.slane %v1007_v3, 2  ;;  %v1013_v51 = vadd.f32 %v2494_v38, %v1012_v20 }
 0x111   : > { %v764_v56 = vadd.f32 %v763_v19, %v762_v21  ;;  %v771_v10 = vadd.f32 %v770_v60, %v769_v27  ;;  %v562_v7 = vadd.f32 %v561_v0, %v560_v18  ;;  %v569_v1 = vadd.f32 %v568_v45, %v567_v35 }
 0x112   : > { %v722_v23 = vadd.f32 %v721_v8, %v720_v50  ;;  %v1009_v30 = vadd.f32 %v1008_v54, %v1007_v3  ;;  %v1014_v25 = vrot.slane %v1013_v51, 2  ;;  %v738_v63 = vadd.f32 %v737_v52, %v736_v58 }
 0x113   : > { %v745_v36 = vadd.f32 %v744_v37, %v743_v13  ;;  %v589_v24 = vrot.slane %v588_v42, 2  ;;  %v596_v44 = vrot.slane %v595_v40, 2  ;;  %v749_v9 = vrot.slane %v748_v57, 2 }
 0x114   : > { %v756_v15 = vrot.slane %v755_v62, 2  ;;  %v1010_v43 = vrot.slane %v1009_v30, 1  ;;  %v1015_v61 = vadd.f32 %v1014_v25, %v1013_v51  ;;  %v765_v41 = vrot.slane %v764_v56, 1 }
 0x115   : > { %v772_v49 = vrot.slane %v771_v10, 1  ;;  %v563_v21 = vrot.slane %v562_v7, 1  ;;  %v570_v27 = vrot.slane %v569_v1, 1  ;;  %v723_v18 = vrot.slane %v722_v23, 1 }
 0x116   : > { %v1011_v19 = vadd.f32 %v1010_v43, %v1009_v30  ;;  %v1016_v47 = vrot.slane %v1015_v61, 1  ;;  %v777_v58 = vadd.f32 %v745_v36, %v3382_v16  ;;  %v590_v13 = vadd.f32 %v589_v24, %v588_v42 }
 0x117   : > { %v597_v14 = vadd.f32 %v596_v44, %v595_v40  ;;  %v750_v60 = vadd.f32 %v749_v9, %v748_v57  ;;  %v757_v0 = vadd.f32 %v756_v15, %v755_v62  ;;  %v766_v45 = vadd.f32 %v765_v41, %v764_v56 }
 0x118   : > { %v1017_v25 = vadd.f32 %v1016_v47, %v1015_v61  ;;  %2499 = vlog2.f32 %v1011_v19  ;;  %v773_v8 = vadd.f32 %v772_v49, %v771_v10  ;;  %v571_v30 = vadd.f32 %v570_v27, %v569_v1 }
 0x119   : > { %v724_v52 = vadd.f32 %v723_v18, %v722_v23  ;;  %v591_v16 = vrot.slane %v590_v13, 1  ;;  %v1136_v42 = vrot.slane %v3357_v22, 2  ;;  %v598_v40 = vrot.slane %v597_v14, 1 }
 0x11a   : > { %v2496_v38 = vpop.eup %2495  ;;  %2501 = vlog2.f32 %v1017_v25  ;;  %v751_v57 = vrot.slane %v750_v60, 1  ;;  %v758_v62 = vrot.slane %v757_v0, 1  ;;  %v1140_v51 = vrot.slane %v3291_v34, 4 }
 0x11b   : > { %v1018_v3 = vrot.slane %v2496_v38, 4  ;;  %v780_v56 = vadd.f32 %v766_v45, %v3387_v46  ;;  %v592_v15 = vadd.f32 %v591_v16, %v590_v13  ;;  %v599_v41 = vadd.f32 %v598_v40, %v597_v14  ;;  %v3532_v45 = vld [vmem:[%s3043_s12 + $0x30] sm:$0xff] }
 0x11c   : > { %v2498_v20 = vpop.eup %2497  ;;  %v752_v49 = vadd.f32 %v751_v57, %v750_v60  ;;  %v1137_v46 = vadd.f32 %v1136_v42, %v3357_v22  ;;  %v1146_v27 = vrot.slane %v3353_v59, 4  ;;  %v958_v42 = vrot.slane %v3532_v45, 4 }
 0x11d   : > { %v1019_v24 = vadd.f32 %v2496_v38, %v1018_v3  ;;  %v1024_v44 = vrot.slane %v2498_v20, 4  ;;  %vm1323_vm13 = vcmask 7168  }
 0x11e   : > { %v3508_v53 = vpop.xlane.xlu1 %402  ;;  %v778_v14 = vadd.f32 %v752_v49, %v592_v15  ;;  %v1138_v60 = vrot.slane %v1137_v46, 1  ;;  %v1147_v22 = vadd.f32 %v1146_v27, %v3353_v59 }
 0x11f   : > { %4112 = vst [vmem:[#allocation30_spill] sm:$0xff] %v3508_v53  ;;  %v729_v53 = vadd.f32 %v728_v12, %v727_v33  ;;  %v776_v33 = vadd.f32 %v738_v63, %v3380_v26  ;;  %v564_v12 = vadd.f32 %v563_v21, %v562_v7  ;;  %v1020_v10 = vrot.slane %v1019_v24, 2 }
 0x120   : > { %v1025_v7 = vadd.f32 %v2498_v20, %v1024_v44  ;;  %v4113_v63 = vrot.slane %v3355_v48, 2  ;;  %v759_v21 = vadd.f32 %v758_v62, %v757_v0  ;;  %v1148_v44 = vrot.slane %v1147_v22, 2 }
 0x121   : > { %v730_v35 = vrot.slane %v729_v53, 1  ;;  %v805_v26 = vcombine.low %v776_v33, %v777_v58  ;;  %v774_v1 = vadd.f32 %v724_v52, %v564_v12  ;;  %v1021_v43 = vadd.f32 %v1020_v10, %v1019_v24 }
 0x122   : > { %v3510_v6 = vpop.xlane.xlu1 %407  ;;  %v3512_v50 = vpop.xlane.xlu0 %392  ;;  %v1131_v36 = vadd.f32 %v4113_v63, %v3355_v48  ;;  %v1026_v61 = vrot.slane %v1025_v7, 2  ;;  %v1141_v48 = vadd.f32 %v1140_v51, %v3291_v34  ;;  %v779_v38 = vadd.f32 %v759_v21, %v599_v41 }
 0x123   : > { %v731_v37 = vadd.f32 %v730_v35, %v729_v53  ;;  %v781_v53 = vadd.f32 %v773_v8, %v3422_v29  ;;  %v812_v9 = vrot.slane %v805_v26, %v3242_v55  ;;  %v1022_v18 = vrot.slane %v1021_v43, 1  ;;  %v3535_v8 = vld [vmem:[%s3043_s12 + $0x38] sm:$0xff] }
 0x124   : > { %v1027_v29 = vadd.f32 %v1026_v61, %v1025_v7  ;;  %v1132_v47 = vrot.slane %v1131_v36, 1  ;;  %v1142_v52 = vrot.slane %v1141_v48, 2  ;;  %v820_v26 = vcombine.low %v778_v14, %v779_v38 }
 0x125   : > { %v775_v23 = vadd.f32 %v731_v37, %v571_v30  ;;  %v835_v35 = vcombine.low %v780_v56, %v781_v53  ;;  %v819_v33 = vrot.slane %v812_v9, %v3242_v55  ;;  %v1023_v58 = vadd.f32 %v1022_v18, %v1021_v43  ;;  %v2500_v0 = vpop.eup %2499 }
 0x126   : > { %v3516_v54 = vpop.xlane.xlu0 %397  ;;  %v1028_v13 = vrot.slane %v1027_v29, 1  ;;  %v1047_v3 = vmul.f32 0.6931472, %v2500_v0  ;;  %v1133_v20 = vadd.f32 %v1132_v47, %v1131_v36  ;;  %v1139_v24 = vadd.f32 %v1138_v60, %v1137_v46 }
 0x127   : > { %v790_v19 = vcombine.low %v774_v1, %v775_v23  ;;  %2503 = vlog2.f32 %v1023_v58  ;;  %v842_v12 = vrot.slane %v835_v35, %v3242_v55  ;;  %v2502_v30 = vpop.eup %2501  ;;  %v855_v37 = vmul.f32 %v3151_v39, %v819_v33 }
 0x128   : > { %v1029_v25 = vadd.f32 %v1028_v13, %v1027_v29  ;;  %v1049_v16 = vmul.f32 0.6931472, %v2502_v30  ;;  %v1060_v59 = vadd.f32 %v1047_v3, %v3443_v2  ;;  %v964_v40 = vrot.slane %v3535_v8, 4 }
 0x129   : > { %v797_v34 = vrot.slane %v790_v19, %v3242_v55  ;;  %v849_v57 = vrot.slane %v842_v12, %v3242_v55  ;;  %v1143_v10 = vadd.f32 %v1142_v52, %v1141_v48  ;;  %v959_v7 = vmax.f32 %v3532_v45, %v958_v42 }
 0x12a   : > { %2505 = vlog2.f32 %v1029_v25  ;;  %v1061_v51 = vadd.f32 %v1049_v16, %v3447_v28  ;;  %v3546_v56 = vsub.f32 %v1060_v59, %v1133_v20  ;;  %v965_v53 = vmax.f32 %v3535_v8, %v964_v40 }
 0x12b   : > { %v804_v62 = vrot.slane %v797_v34, %v3242_v55  ;;  %v873_v2 = vrot.slane %v855_v37, %v3064_v4  ;;  %v827_v1 = vrot.slane %v820_v26, %v3242_v55  ;;  %v1149_v63 = vadd.f32 %v1148_v44, %v1147_v22 }
 0x12c   : > { %v3552_v23 = vsub.f32 %v1061_v51, %v1139_v24  ;;  %v877_v36 = vrot.slane %v855_v37, %v3067_v5  ;;  %v960_v9 = vrot.slane %v959_v7, 2  ;;  %v966_v15 = vrot.slane %v965_v53, 2  ;;  %v4114_v24 = vld [vmem:[#allocation29_spill] sm:$0xff] }
 0x12d   : > { %v857_v28 = vmul.f32 %v3105_v17, %v849_v57  ;;  %v854_v43 = vmul.f32 %v3137_v31, %v804_v62  ;;  %v1144_v41 = vrot.slane %v1143_v10, 1  ;;  %v907_v46 = vsel %vm388_vm1, %v873_v2, 0.0 }
 0x12e   : > { %v1195_v61 = vcombine.low %v3546_v56, %v3552_v23  ;;  %v961_v49 = vmax.f32 %v959_v7, %v960_v9  ;;  %v967_v21 = vmax.f32 %v965_v53, %v966_v15  ;;  %v834_v27 = vrot.slane %v827_v1, %v3242_v55 }
 0x12f   : > { %v908_v18 = vsel %vm388_vm1, %v877_v36, 0.0  ;;  %v1150_v29 = vrot.slane %v1149_v63, 1  ;;  %v889_v48 = vrot.slane %v857_v28, %v3064_v4  ;;  %v893_v33 = vrot.slane %v857_v28, %v3067_v5 }
 0x130   : > { %v962_v35 = vrot.slane %v961_v49, 1  ;;  %v968_v19 = vrot.slane %v967_v21, 1  ;;  %v865_v58 = vrot.slane %v854_v43, %v3064_v4  ;;  %v869_v13 = vrot.slane %v854_v43, %v3067_v5 }
 0x131   : > { %v1145_v38 = vadd.f32 %v1144_v41, %v1143_v10  ;;  %v856_v25 = vmul.f32 %v3083_v11, %v834_v27  ;;  %v909_v12 = vadd.f32 %v908_v18, %v907_v46  ;;  %v1151_v20 = vadd.f32 %v1150_v29, %v1149_v63 }
 0x132   : > { %v3566_v60 = vmax.f32 %v961_v49, %v962_v35  ;;  %v3568_v0 = vmax.f32 %v967_v21, %v968_v19  ;;  %v917_v30 = vsel %vm388_vm1, %v889_v48, 0.0  ;;  %v918_v52 = vsel %vm388_vm1, %v893_v33, 0.0 }
 0x133   : > { %v902_v16 = vsel %vm388_vm1, %v865_v58, 0.0  ;;  %v903_v59 = vsel %vm388_vm1, %v869_v13, 0.0  ;;  %v885_v40 = vrot.slane %v856_v25, %v3067_v5  ;;  %v919_v51 = vadd.f32 %v918_v52, %v917_v30 }
 0x134   : > { %v2504_v47 = vpop.eup %2503  ;;  %v976_v37 = vsub.f32 %v3532_v45, %v3566_v60  ;;  %v977_v26 = vsub.f32 %v3535_v8, %v3568_v0  ;;  %v904_v7 = vadd.f32 %v903_v59, %v902_v16  ;;  %v1114_v29 = vsel %vm3116_vm5, %v3532_v45, 0.0 }
 0x135   : > { %v1051_v14 = vmul.f32 0.6931472, %v2504_v47  ;;  %v913_v1 = vsel %vm388_vm1, %v885_v40, 0.0  ;;  %v1115_v19 = vsel %vm3121_vm6, %v3535_v8, 0.0 }
 0x136   : > { %v990_v57 = vmul.f32 1.442695, %v976_v37  ;;  %v992_v62 = vmul.f32 1.442695, %v977_v26 }
 0x137   : > { %v2506_v22 = vpop.eup %2505  ;;  %v1062_v3 = vadd.f32 %v1051_v14, %v3489_v32  ;;  %v881_v32 = vrot.slane %v856_v25, %v3064_v4  ;;  %v1152_v14 = vrot.slane %v1114_v29, 4 }
 0x138   : > { %v1053_v34 = vmul.f32 0.6931472, %v2506_v22  ;;  %2507 = vpow2.f32 %v990_v57 }
 0x139   : > { %v3581_v42 = vsub.f32 %v1062_v3, %v1145_v38  ;;  %2509 = vpow2.f32 %v992_v62  ;;  %v912_v2 = vsel %vm388_vm1, %v881_v32, 0.0  ;;  %v1158_v38 = vrot.slane %v1115_v19, 4 }
 0x13a   : > { %v1063_v44 = vadd.f32 %v1053_v34, %v4114_v24  ;;  %v914_v63 = vadd.f32 %v913_v1, %v912_v2  ;;  %v1202_v24 = vrot.slane %v1195_v61, %v3242_v55 }
 0x13b   : > { %v1159_v34 = vadd.f32 %v1158_v38, %v1115_v19 }
 0x13c   : > { %v3585_v10 = vsub.f32 %v1063_v44, %v1151_v20 }
 0x13d   : > { %v1160_v30 = vrot.slane %v1159_v34, 2 }
 0x13e   : > { %v1210_v53 = vcombine.low %v3581_v42, %v3585_v10 }
 0x13f   : > { %v1161_v16 = vadd.f32 %v1160_v30, %v1159_v34 }
 0x140   : > { %910 = vadd.xlane.f32.xlu1 %v909_v12  ;;  %v1153_v12 = vadd.f32 %v1152_v14, %v1114_v29 }
 0x141   : > { %v1162_v32 = vrot.slane %v1161_v16, 1 }
 0x142   : > { %v1154_v20 = vrot.slane %v1153_v12, 2 }
 0x143   : > { %v1163_v1 = vadd.f32 %v1162_v32, %v1161_v16 }
 0x144   : > { %920 = vadd.xlane.f32.xlu1 %v919_v51  ;;  %v1155_v26 = vadd.f32 %v1154_v20, %v1153_v12  ;;  %v1217_v20 = vrot.slane %v1210_v53, %v3242_v55 }
 0x145   : > { %v2508_v36 = vpop.eup %2507 }
 0x146   : > { %905 = vadd.xlane.f32.xlu0 %v904_v7  ;;  %v2510_v9 = vpop.eup %2509  ;;  %v1030_v15 = vrot.slane %v2508_v36, 4  ;;  %v1156_v44 = vrot.slane %v1155_v26, 1  ;;  %v1224_v30 = vrot.slane %v1217_v20, %v3242_v55 }
 0x147   : > { %v1036_v28 = vrot.slane %v2510_v9, 4 }
 0x148   : > { %v1031_v43 = vadd.f32 %v2508_v36, %v1030_v15  ;;  %v1157_v2 = vadd.f32 %v1156_v44, %v1155_v26  ;;  %v1209_v36 = vrot.slane %v1202_v24, %v3242_v55 }
 0x149   : > { %v1037_v41 = vadd.f32 %v2510_v9, %v1036_v28 }
 0x14a   : > { %915 = vadd.xlane.f32.xlu0 %v914_v63  ;;  %v1032_v49 = vrot.slane %v1031_v43, 2 }
 0x14b   : > { %v1038_v21 = vrot.slane %v1037_v41, 2 }
 0x14c   : > { %v1033_v46 = vadd.f32 %v1032_v49, %v1031_v43  ;;  %v1245_v49 = vsel %vm333_vm8, 0.0, %v1209_v36 }
 0x14d   : > { %v1039_v27 = vadd.f32 %v1038_v21, %v1037_v41 }
 0x14e   : > { %v1034_v47 = vrot.slane %v1033_v46, 1 }
 0x14f   : > { %v1040_v48 = vrot.slane %v1039_v27, 1 }
 0x150   : > { %v1035_v13 = vadd.f32 %v1034_v47, %v1033_v46 }
 0x151   : > { %v1041_v22 = vadd.f32 %v1040_v48, %v1039_v27  ;;  %v3630_v27 = vrot.slane %v1245_v49, %v3064_v4 }
 0x152   : > { %2511 = vlog2.f32 %v1035_v13 }
 0x153   : > { %2513 = vlog2.f32 %v1041_v22 }
 0x159   : > { %v1307_v33 = vpop.trf.xlu1  ;;  %v1275_v58 = vpop.trf.xlu0 }
 0x15a   : > { %1340 = vst.msk [vmem:[#allocation2 + $0x80] sm:$0xff] %vm1323_vm13, %v1307_v33  ;;  %1324 = vst.msk [vmem:[#allocation2] sm:$0xff] %vm1323_vm13, %v1275_v58 }
 0x15d   : > { %v1308_v45 = vpop.trf.xlu1  ;;  %v1276_v25 = vpop.trf.xlu0 }
 0x15e   : > { %1341 = vst.msk [vmem:[#allocation2 + $0x88] sm:$0xff] %vm1323_vm13, %v1308_v45  ;;  %1325 = vst.msk [vmem:[#allocation2 + $0x8] sm:$0xff] %vm1323_vm13, %v1276_v25 }
 0x15f   : > { %v2512_v59 = vpop.eup %2511 }
 0x160   : > { %v2514_v40 = vpop.eup %2513  ;;  %v1055_v51 = vmul.f32 0.6931472, %v2512_v59 }
 0x161   : > { %v1309_v8 = vpop.trf.xlu1  ;;  %v1277_v3 = vpop.trf.xlu0  ;;  %v1057_v7 = vmul.f32 0.6931472, %v2514_v40 }
 0x162   : > { %1342 = vst.msk [vmem:[#allocation2 + $0x90] sm:$0xff] %vm1323_vm13, %v1309_v8  ;;  %1326 = vst.msk [vmem:[#allocation2 + $0x10] sm:$0xff] %vm1323_vm13, %v1277_v3  ;;  %v1064_v63 = vadd.f32 %v1055_v51, %v3566_v60 }
 0x163   : > { %v1065_v9 = vadd.f32 %v1057_v7, %v3568_v0  ;;  %v3627_v0 = vrot.slane %v1245_v49, %v3067_v5 }
 0x164   : > { %v3614_v28 = vsub.f32 %v1064_v63, %v1157_v2 }
 0x165   : > { %v1310_v52 = vpop.trf.xlu1  ;;  %v1278_v37 = vpop.trf.xlu0  ;;  %v3618_v43 = vsub.f32 %v1065_v9, %v1163_v1 }
 0x166   : > { %1343 = vst.msk [vmem:[#allocation2 + $0x98] sm:$0xff] %vm1323_vm13, %v1310_v52  ;;  %1327 = vst.msk [vmem:[#allocation2 + $0x18] sm:$0xff] %vm1323_vm13, %v1278_v37  ;;  %v1246_v37 = vsel %vm334_vm0, 0.0, %v1224_v30 }
 0x167   : > { %v1225_v60 = vcombine.low %v3614_v28, %v3618_v43  ;;  %v3660_v26 = vrot.slane %v1246_v37, %v3067_v5  ;;  %v3663_v16 = vrot.slane %v1246_v37, %v3064_v4 }
 0x169   : > { %v1311_v57 = vpop.trf.xlu1  ;;  %v1279_v62 = vpop.trf.xlu0  ;;  %v1232_v32 = vrot.slane %v1225_v60, %v3242_v55 }
 0x16a   : > { %1344 = vst.msk [vmem:[#allocation2 + $0xa0] sm:$0xff] %vm1323_vm13, %v1311_v57  ;;  %1328 = vst.msk [vmem:[#allocation2 + $0x20] sm:$0xff] %vm1323_vm13, %v1279_v62 }
 0x16b   : > { %v1239_v40 = vrot.slane %v1232_v32, %v3242_v55 }
 0x16d   : > { %v1312_v61 = vpop.trf.xlu1  ;;  %v1280_v15 = vpop.trf.xlu0  ;;  %v1247_v62 = vsel %vm335_vm2, 0.0, %v1239_v40 }
 0x16e   : > { %1345 = vst.msk [vmem:[#allocation2 + $0xa8] sm:$0xff] %vm1323_vm13, %v1312_v61  ;;  %1329 = vst.msk [vmem:[#allocation2 + $0x28] sm:$0xff] %vm1323_vm13, %v1280_v15  ;;  %v3680_v51 = vrot.slane %v1247_v62, %v3067_v5  ;;  %v3683_v7 = vrot.slane %v1247_v62, %v3064_v4 }
 0x171   : > { %v1313_v21 = vpop.trf.xlu1  ;;  %v1281_v46 = vpop.trf.xlu0 }
 0x172   : > { %1346 = vst.msk [vmem:[#allocation2 + $0xb0] sm:$0xff] %vm1323_vm13, %v1313_v21  ;;  %1330 = vst.msk [vmem:[#allocation2 + $0x30] sm:$0xff] %vm1323_vm13, %v1281_v46 }
 0x175   : > { %v1314_v18 = vpop.trf.xlu1  ;;  %v1282_v29 = vpop.trf.xlu0 }
 0x176   : > { %1347 = vst.msk [vmem:[#allocation2 + $0xb8] sm:$0xff] %vm1323_vm13, %v1314_v18  ;;  %1331 = vst.msk [vmem:[#allocation2 + $0x38] sm:$0xff] %vm1323_vm13, %v1282_v29 }
 0x177   : > { %1399 = vxpose.xlu1.b32.start.end [1/1] (short) %v3627_v0, 128  ;;  %1367 = vxpose.xlu0.b32.start.end [1/1] (short) %v3630_v27, 128 }
 0x179   : > { %v1315_v35 = vpop.trf.xlu1  ;;  %v1283_v19 = vpop.trf.xlu0 }
 0x17a   : > { %1348 = vst.msk [vmem:[#allocation2 + $0xc0] sm:$0xff] %vm1323_vm13, %v1315_v35  ;;  %1332 = vst.msk [vmem:[#allocation2 + $0x40] sm:$0xff] %vm1323_vm13, %v1283_v19 }
 0x17d   : > { %v1316_v47 = vpop.trf.xlu1  ;;  %v1284_v48 = vpop.trf.xlu0 }
 0x17e   : > { %1349 = vst.msk [vmem:[#allocation2 + $0xc8] sm:$0xff] %vm1323_vm13, %v1316_v47  ;;  %1333 = vst.msk [vmem:[#allocation2 + $0x48] sm:$0xff] %vm1323_vm13, %v1284_v48 }
 0x181   : > { %v1317_v33 = vpop.trf.xlu1  ;;  %v1285_v58 = vpop.trf.xlu0 }
 0x182   : > { %1350 = vst.msk [vmem:[#allocation2 + $0xd0] sm:$0xff] %vm1323_vm13, %v1317_v33  ;;  %1334 = vst.msk [vmem:[#allocation2 + $0x50] sm:$0xff] %vm1323_vm13, %v1285_v58 }
 0x185   : > { %v1318_v13 = vpop.trf.xlu1  ;;  %v1286_v14 = vpop.trf.xlu0 }
 0x186   : > { %1351 = vst.msk [vmem:[#allocation2 + $0xd8] sm:$0xff] %vm1323_vm13, %v1318_v13  ;;  %1335 = vst.msk [vmem:[#allocation2 + $0x58] sm:$0xff] %vm1323_vm13, %v1286_v14 }
 0x189   : > { %v1319_v38 = vpop.trf.xlu1  ;;  %v1287_v22 = vpop.trf.xlu0 }
 0x18a   : > { %1352 = vst.msk [vmem:[#allocation2 + $0xe0] sm:$0xff] %vm1323_vm13, %v1319_v38  ;;  %1336 = vst.msk [vmem:[#allocation2 + $0x60] sm:$0xff] %vm1323_vm13, %v1287_v22 }
 0x18d   : > { %v1320_v45 = vpop.trf.xlu1  ;;  %v1288_v25 = vpop.trf.xlu0 }
 0x18e   : > { %1353 = vst.msk [vmem:[#allocation2 + $0xe8] sm:$0xff] %vm1323_vm13, %v1320_v45  ;;  %1337 = vst.msk [vmem:[#allocation2 + $0x68] sm:$0xff] %vm1323_vm13, %v1288_v25 }
 0x191   : > { %v1321_v12 = vpop.trf.xlu1  ;;  %v1289_v34 = vpop.trf.xlu0 }
 0x192   : > { %1354 = vst.msk [vmem:[#allocation2 + $0xf0] sm:$0xff] %vm1323_vm13, %v1321_v12  ;;  %1338 = vst.msk [vmem:[#allocation2 + $0x70] sm:$0xff] %vm1323_vm13, %v1289_v34 }
 0x195   : > { %v1322_v8 = vpop.trf.xlu1  ;;  %v1290_v3 = vpop.trf.xlu0 }
 0x196   : > { %1355 = vst.msk [vmem:[#allocation2 + $0xf8] sm:$0xff] %vm1323_vm13, %v1322_v8  ;;  %1339 = vst.msk [vmem:[#allocation2 + $0x78] sm:$0xff] %vm1323_vm13, %v1290_v3 }
 0x1b4   : > { %1507 = vxpose.xlu1.b32.start.end [1/1] (short) %v3660_v26, 128  ;;  %1475 = vxpose.xlu0.b32.start.end [1/1] (short) %v3663_v16, 128 }
 0x1c9   : > { %v3667_v59 = vpop.xlane.xlu1 %910 }
 0x1cd   : > { %v3669_v24 = vpop.xlane.xlu1 %920 }
 0x1cf   : > { %v3671_v53 = vpop.xlane.xlu0 %905 }
 0x1d3   : > { %v3673_v44 = vpop.xlane.xlu0 %915 }
 0x1f1   : > { %1615 = vxpose.xlu1.b32.start.end [1/1] (short) %v3680_v51, 128  ;;  %1583 = vxpose.xlu0.b32.start.end [1/1] (short) %v3683_v7, 128 }
 0x1f3   : > { %v1415_v2 = vpop.trf.xlu1  ;;  %v1383_v1 = vpop.trf.xlu0 }
 0x1f4   : > { %1448 = vst.msk [vmem:[#allocation2 + $0x180] sm:$0xff] %vm1323_vm13, %v1415_v2  ;;  %1432 = vst.msk [vmem:[#allocation2 + $0x100] sm:$0xff] %vm1323_vm13, %v1383_v1 }
 0x1f7   : > { %v1416_v63 = vpop.trf.xlu1  ;;  %v1384_v36 = vpop.trf.xlu0 }
 0x1f8   : > { %1449 = vst.msk [vmem:[#allocation2 + $0x188] sm:$0xff] %vm1323_vm13, %v1416_v63  ;;  %1433 = vst.msk [vmem:[#allocation2 + $0x108] sm:$0xff] %vm1323_vm13, %v1384_v36 }
 0x1fb   : > { %v1417_v9 = vpop.trf.xlu1  ;;  %v1385_v61 = vpop.trf.xlu0 }
 0x1fc   : > { %1450 = vst.msk [vmem:[#allocation2 + $0x190] sm:$0xff] %vm1323_vm13, %v1417_v9  ;;  %1434 = vst.msk [vmem:[#allocation2 + $0x110] sm:$0xff] %vm1323_vm13, %v1385_v61 }
 0x1ff   : > { %v1418_v15 = vpop.trf.xlu1  ;;  %v1386_v41 = vpop.trf.xlu0 }
 0x200   : > { %1451 = vst.msk [vmem:[#allocation2 + $0x198] sm:$0xff] %vm1323_vm13, %v1418_v15  ;;  %1435 = vst.msk [vmem:[#allocation2 + $0x118] sm:$0xff] %vm1323_vm13, %v1386_v41 }
 0x203   : > { %v1419_v49 = vpop.trf.xlu1  ;;  %v1387_v60 = vpop.trf.xlu0 }
 0x204   : > { %1452 = vst.msk [vmem:[#allocation2 + $0x1a0] sm:$0xff] %vm1323_vm13, %v1419_v49  ;;  %1436 = vst.msk [vmem:[#allocation2 + $0x120] sm:$0xff] %vm1323_vm13, %v1387_v60 }
 0x207   : > { %v1420_v21 = vpop.trf.xlu1  ;;  %v1388_v46 = vpop.trf.xlu0 }
 0x208   : > { %1453 = vst.msk [vmem:[#allocation2 + $0x1a8] sm:$0xff] %vm1323_vm13, %v1420_v21  ;;  %1437 = vst.msk [vmem:[#allocation2 + $0x128] sm:$0xff] %vm1323_vm13, %v1388_v46 }
 0x20b   : > { %v1421_v18 = vpop.trf.xlu1  ;;  %v1389_v29 = vpop.trf.xlu0 }
 0x20c   : > { %1454 = vst.msk [vmem:[#allocation2 + $0x1b0] sm:$0xff] %vm1323_vm13, %v1421_v18  ;;  %1438 = vst.msk [vmem:[#allocation2 + $0x130] sm:$0xff] %vm1323_vm13, %v1389_v29 }
 0x20f   : > { %v1422_v35 = vpop.trf.xlu1  ;;  %v1390_v19 = vpop.trf.xlu0 }
 0x210   : > { %1455 = vst.msk [vmem:[#allocation2 + $0x1b8] sm:$0xff] %vm1323_vm13, %v1422_v35  ;;  %1439 = vst.msk [vmem:[#allocation2 + $0x138] sm:$0xff] %vm1323_vm13, %v1390_v19 }
 0x213   : > { %v1423_v47 = vpop.trf.xlu1  ;;  %v1391_v48 = vpop.trf.xlu0 }
 0x214   : > { %1456 = vst.msk [vmem:[#allocation2 + $0x1c0] sm:$0xff] %vm1323_vm13, %v1423_v47  ;;  %1440 = vst.msk [vmem:[#allocation2 + $0x140] sm:$0xff] %vm1323_vm13, %v1391_v48 }
 0x217   : > { %v1424_v33 = vpop.trf.xlu1  ;;  %v1392_v58 = vpop.trf.xlu0 }
 0x218   : > { %1457 = vst.msk [vmem:[#allocation2 + $0x1c8] sm:$0xff] %vm1323_vm13, %v1424_v33  ;;  %1441 = vst.msk [vmem:[#allocation2 + $0x148] sm:$0xff] %vm1323_vm13, %v1392_v58 }
 0x21b   : > { %v1425_v13 = vpop.trf.xlu1  ;;  %v1393_v14 = vpop.trf.xlu0 }
 0x21c   : > { %1458 = vst.msk [vmem:[#allocation2 + $0x1d0] sm:$0xff] %vm1323_vm13, %v1425_v13  ;;  %1442 = vst.msk [vmem:[#allocation2 + $0x150] sm:$0xff] %vm1323_vm13, %v1393_v14 }
 0x21f   : > { %v1426_v38 = vpop.trf.xlu1  ;;  %v1394_v22 = vpop.trf.xlu0 }
 0x220   : > { %1459 = vst.msk [vmem:[#allocation2 + $0x1d8] sm:$0xff] %vm1323_vm13, %v1426_v38  ;;  %1443 = vst.msk [vmem:[#allocation2 + $0x158] sm:$0xff] %vm1323_vm13, %v1394_v22 }
 0x223   : > { %v1427_v45 = vpop.trf.xlu1  ;;  %v1395_v25 = vpop.trf.xlu0 }
 0x224   : > { %1460 = vst.msk [vmem:[#allocation2 + $0x1e0] sm:$0xff] %vm1323_vm13, %v1427_v45  ;;  %1444 = vst.msk [vmem:[#allocation2 + $0x160] sm:$0xff] %vm1323_vm13, %v1395_v25 }
 0x227   : > { %v1428_v12 = vpop.trf.xlu1  ;;  %v1396_v34 = vpop.trf.xlu0 }
 0x228   : > { %1461 = vst.msk [vmem:[#allocation2 + $0x1e8] sm:$0xff] %vm1323_vm13, %v1428_v12  ;;  %1445 = vst.msk [vmem:[#allocation2 + $0x168] sm:$0xff] %vm1323_vm13, %v1396_v34 }
 0x22b   : > { %v1429_v8 = vpop.trf.xlu1  ;;  %v1397_v3 = vpop.trf.xlu0 }
 0x22c   : > { %1462 = vst.msk [vmem:[#allocation2 + $0x1f0] sm:$0xff] %vm1323_vm13, %v1429_v8  ;;  %1446 = vst.msk [vmem:[#allocation2 + $0x170] sm:$0xff] %vm1323_vm13, %v1397_v3 }
 0x22f   : > { %v1430_v20 = vpop.trf.xlu1  ;;  %v1398_v30 = vpop.trf.xlu0 }
 0x230   : > { %1463 = vst.msk [vmem:[#allocation2 + $0x1f8] sm:$0xff] %vm1323_vm13, %v1430_v20  ;;  %1447 = vst.msk [vmem:[#allocation2 + $0x178] sm:$0xff] %vm1323_vm13, %v1398_v30 }
 0x233   : > { %v1523_v52 = vpop.trf.xlu1  ;;  %v1491_v37 = vpop.trf.xlu0 }
 0x234   : > { %1556 = vst.msk [vmem:[#allocation2 + $0x280] sm:$0xff] %vm1323_vm13, %v1523_v52  ;;  %1540 = vst.msk [vmem:[#allocation2 + $0x200] sm:$0xff] %vm1323_vm13, %v1491_v37 }
 0x237   : > { %v1524_v32 = vpop.trf.xlu1  ;;  %v1492_v40 = vpop.trf.xlu0 }
 0x238   : > { %1557 = vst.msk [vmem:[#allocation2 + $0x288] sm:$0xff] %vm1323_vm13, %v1524_v32  ;;  %1541 = vst.msk [vmem:[#allocation2 + $0x208] sm:$0xff] %vm1323_vm13, %v1492_v40 }
 0x23b   : > { %v1525_v57 = vpop.trf.xlu1  ;;  %v1493_v62 = vpop.trf.xlu0 }
 0x23c   : > { %1558 = vst.msk [vmem:[#allocation2 + $0x290] sm:$0xff] %vm1323_vm13, %v1525_v57  ;;  %1542 = vst.msk [vmem:[#allocation2 + $0x210] sm:$0xff] %vm1323_vm13, %v1493_v62 }
 0x23f   : > { %v1526_v2 = vpop.trf.xlu1  ;;  %v1494_v1 = vpop.trf.xlu0 }
 0x240   : > { %1559 = vst.msk [vmem:[#allocation2 + $0x298] sm:$0xff] %vm1323_vm13, %v1526_v2  ;;  %1543 = vst.msk [vmem:[#allocation2 + $0x218] sm:$0xff] %vm1323_vm13, %v1494_v1 }
 0x243   : > { %v1527_v63 = vpop.trf.xlu1  ;;  %v1495_v36 = vpop.trf.xlu0 }
 0x244   : > { %1560 = vst.msk [vmem:[#allocation2 + $0x2a0] sm:$0xff] %vm1323_vm13, %v1527_v63  ;;  %1544 = vst.msk [vmem:[#allocation2 + $0x220] sm:$0xff] %vm1323_vm13, %v1495_v36 }
 0x247   : > { %v1528_v9 = vpop.trf.xlu1  ;;  %v1496_v61 = vpop.trf.xlu0 }
 0x248   : > { %1561 = vst.msk [vmem:[#allocation2 + $0x2a8] sm:$0xff] %vm1323_vm13, %v1528_v9  ;;  %1545 = vst.msk [vmem:[#allocation2 + $0x228] sm:$0xff] %vm1323_vm13, %v1496_v61 }
 0x24b   : > { %v1529_v15 = vpop.trf.xlu1  ;;  %v1497_v41 = vpop.trf.xlu0 }
 0x24c   : > { %1562 = vst.msk [vmem:[#allocation2 + $0x2b0] sm:$0xff] %vm1323_vm13, %v1529_v15  ;;  %1546 = vst.msk [vmem:[#allocation2 + $0x230] sm:$0xff] %vm1323_vm13, %v1497_v41 }
 0x24f   : > { %v1530_v49 = vpop.trf.xlu1  ;;  %v1498_v60 = vpop.trf.xlu0 }
 0x250   : > { %1563 = vst.msk [vmem:[#allocation2 + $0x2b8] sm:$0xff] %vm1323_vm13, %v1530_v49  ;;  %1547 = vst.msk [vmem:[#allocation2 + $0x238] sm:$0xff] %vm1323_vm13, %v1498_v60 }
 0x253   : > { %v1531_v21 = vpop.trf.xlu1  ;;  %v1499_v46 = vpop.trf.xlu0 }
 0x254   : > { %1564 = vst.msk [vmem:[#allocation2 + $0x2c0] sm:$0xff] %vm1323_vm13, %v1531_v21  ;;  %1548 = vst.msk [vmem:[#allocation2 + $0x240] sm:$0xff] %vm1323_vm13, %v1499_v46 }
 0x257   : > { %v1532_v18 = vpop.trf.xlu1  ;;  %v1500_v29 = vpop.trf.xlu0 }
 0x258   : > { %1565 = vst.msk [vmem:[#allocation2 + $0x2c8] sm:$0xff] %vm1323_vm13, %v1532_v18  ;;  %1549 = vst.msk [vmem:[#allocation2 + $0x248] sm:$0xff] %vm1323_vm13, %v1500_v29 }
 0x25b   : > { %v1533_v35 = vpop.trf.xlu1  ;;  %v1501_v19 = vpop.trf.xlu0 }
 0x25c   : > { %1566 = vst.msk [vmem:[#allocation2 + $0x2d0] sm:$0xff] %vm1323_vm13, %v1533_v35  ;;  %1550 = vst.msk [vmem:[#allocation2 + $0x250] sm:$0xff] %vm1323_vm13, %v1501_v19 }
 0x25f   : > { %v1534_v47 = vpop.trf.xlu1  ;;  %v1502_v48 = vpop.trf.xlu0 }
 0x260   : > { %1567 = vst.msk [vmem:[#allocation2 + $0x2d8] sm:$0xff] %vm1323_vm13, %v1534_v47  ;;  %1551 = vst.msk [vmem:[#allocation2 + $0x258] sm:$0xff] %vm1323_vm13, %v1502_v48 }
 0x263   : > { %v1535_v33 = vpop.trf.xlu1  ;;  %v1503_v58 = vpop.trf.xlu0 }
 0x264   : > { %1568 = vst.msk [vmem:[#allocation2 + $0x2e0] sm:$0xff] %vm1323_vm13, %v1535_v33  ;;  %1552 = vst.msk [vmem:[#allocation2 + $0x260] sm:$0xff] %vm1323_vm13, %v1503_v58 }
 0x267   : > { %v1536_v13 = vpop.trf.xlu1  ;;  %v1504_v14 = vpop.trf.xlu0 }
 0x268   : > { %1569 = vst.msk [vmem:[#allocation2 + $0x2e8] sm:$0xff] %vm1323_vm13, %v1536_v13  ;;  %1553 = vst.msk [vmem:[#allocation2 + $0x268] sm:$0xff] %vm1323_vm13, %v1504_v14  ;;  %v3784_v13 = vmov 0.0   ;;  %v3786_v14 = vmov 0.0  }
 0x26b   : > { %v1537_v38 = vpop.trf.xlu1  ;;  %v1505_v22 = vpop.trf.xlu0 }
 0x26c   : > { %1570 = vst.msk [vmem:[#allocation2 + $0x2f0] sm:$0xff] %vm1323_vm13, %v1537_v38  ;;  %1554 = vst.msk [vmem:[#allocation2 + $0x270] sm:$0xff] %vm1323_vm13, %v1505_v22  ;;  %v3788_v38 = vmov 0.0   ;;  %v3790_v22 = vmov 0.0  }
 0x26f   : > { %v1538_v45 = vpop.trf.xlu1  ;;  %v1506_v25 = vpop.trf.xlu0 }
 0x270   : > { %1571 = vst.msk [vmem:[#allocation2 + $0x2f8] sm:$0xff] %vm1323_vm13, %v1538_v45  ;;  %1555 = vst.msk [vmem:[#allocation2 + $0x278] sm:$0xff] %vm1323_vm13, %v1506_v25  ;;  %v3792_v45 = vmov 0.0   ;;  %v3794_v25 = vmov 0.0  }
 0x273   : > { %v1631_v12 = vpop.trf.xlu1  ;;  %v1599_v34 = vpop.trf.xlu0 }
 0x274   : > { %1664 = vst.msk [vmem:[#allocation2 + $0x380] sm:$0xff] %vm1323_vm13, %v1631_v12  ;;  %1648 = vst.msk [vmem:[#allocation2 + $0x300] sm:$0xff] %vm1323_vm13, %v1599_v34  ;;  %v3796_v12 = vmov 0.0   ;;  %v3798_v34 = vmov 0.0  }
 0x277   : > { %v1632_v8 = vpop.trf.xlu1  ;;  %v1600_v3 = vpop.trf.xlu0 }
 0x278   : > { %1665 = vst.msk [vmem:[#allocation2 + $0x388] sm:$0xff] %vm1323_vm13, %v1632_v8  ;;  %1649 = vst.msk [vmem:[#allocation2 + $0x308] sm:$0xff] %vm1323_vm13, %v1600_v3 }
 0x27b   : > { %v1633_v20 = vpop.trf.xlu1  ;;  %v1601_v30 = vpop.trf.xlu0 }
 0x27c   : > { %1666 = vst.msk [vmem:[#allocation2 + $0x390] sm:$0xff] %vm1323_vm13, %v1633_v20  ;;  %1650 = vst.msk [vmem:[#allocation2 + $0x310] sm:$0xff] %vm1323_vm13, %v1601_v30 }
 0x27f   : > { %v1634_v52 = vpop.trf.xlu1  ;;  %v1602_v37 = vpop.trf.xlu0 }
 0x280   : > { %1667 = vst.msk [vmem:[#allocation2 + $0x398] sm:$0xff] %vm1323_vm13, %v1634_v52  ;;  %1651 = vst.msk [vmem:[#allocation2 + $0x318] sm:$0xff] %vm1323_vm13, %v1602_v37 }
 0x283   : > { %v1635_v32 = vpop.trf.xlu1  ;;  %v1603_v40 = vpop.trf.xlu0 }
 0x284   : > { %1668 = vst.msk [vmem:[#allocation2 + $0x3a0] sm:$0xff] %vm1323_vm13, %v1635_v32  ;;  %1652 = vst.msk [vmem:[#allocation2 + $0x320] sm:$0xff] %vm1323_vm13, %v1603_v40 }
 0x287   : > { %v1636_v57 = vpop.trf.xlu1  ;;  %v1604_v62 = vpop.trf.xlu0 }
 0x288   : > { %1669 = vst.msk [vmem:[#allocation2 + $0x3a8] sm:$0xff] %vm1323_vm13, %v1636_v57  ;;  %1653 = vst.msk [vmem:[#allocation2 + $0x328] sm:$0xff] %vm1323_vm13, %v1604_v62 }
 0x28b   : > { %v1637_v2 = vpop.trf.xlu1  ;;  %v1605_v1 = vpop.trf.xlu0 }
 0x28c   : > { %1670 = vst.msk [vmem:[#allocation2 + $0x3b0] sm:$0xff] %vm1323_vm13, %v1637_v2  ;;  %1654 = vst.msk [vmem:[#allocation2 + $0x330] sm:$0xff] %vm1323_vm13, %v1605_v1 }
 0x28f   : > { %v1638_v63 = vpop.trf.xlu1  ;;  %v1606_v36 = vpop.trf.xlu0 }
 0x290   : > { %1671 = vst.msk [vmem:[#allocation2 + $0x3b8] sm:$0xff] %vm1323_vm13, %v1638_v63  ;;  %1655 = vst.msk [vmem:[#allocation2 + $0x338] sm:$0xff] %vm1323_vm13, %v1606_v36 }
 0x293   : > { %v1639_v9 = vpop.trf.xlu1  ;;  %v1607_v61 = vpop.trf.xlu0 }
 0x294   : > { %1672 = vst.msk [vmem:[#allocation2 + $0x3c0] sm:$0xff] %vm1323_vm13, %v1639_v9  ;;  %1656 = vst.msk [vmem:[#allocation2 + $0x340] sm:$0xff] %vm1323_vm13, %v1607_v61 }
 0x297   : > { %v1640_v15 = vpop.trf.xlu1  ;;  %v1608_v41 = vpop.trf.xlu0 }
 0x298   : > { %1673 = vst.msk [vmem:[#allocation2 + $0x3c8] sm:$0xff] %vm1323_vm13, %v1640_v15  ;;  %1657 = vst.msk [vmem:[#allocation2 + $0x348] sm:$0xff] %vm1323_vm13, %v1608_v41 }
 0x29b   : > { %v1641_v49 = vpop.trf.xlu1  ;;  %v1609_v60 = vpop.trf.xlu0 }
 0x29c   : > { %1674 = vst.msk [vmem:[#allocation2 + $0x3d0] sm:$0xff] %vm1323_vm13, %v1641_v49  ;;  %1658 = vst.msk [vmem:[#allocation2 + $0x350] sm:$0xff] %vm1323_vm13, %v1609_v60 }
 0x29f   : > { %v1642_v21 = vpop.trf.xlu1  ;;  %v1610_v46 = vpop.trf.xlu0 }
 0x2a0   : > { %1675 = vst.msk [vmem:[#allocation2 + $0x3d8] sm:$0xff] %vm1323_vm13, %v1642_v21  ;;  %1659 = vst.msk [vmem:[#allocation2 + $0x358] sm:$0xff] %vm1323_vm13, %v1610_v46 }
 0x2a3   : > { %v1643_v18 = vpop.trf.xlu1  ;;  %v1611_v29 = vpop.trf.xlu0 }
 0x2a4   : > { %1676 = vst.msk [vmem:[#allocation2 + $0x3e0] sm:$0xff] %vm1323_vm13, %v1643_v18  ;;  %1660 = vst.msk [vmem:[#allocation2 + $0x360] sm:$0xff] %vm1323_vm13, %v1611_v29 }
 0x2a7   : > { %v1644_v35 = vpop.trf.xlu1  ;;  %v1612_v19 = vpop.trf.xlu0 }
 0x2a8   : > { %1677 = vst.msk [vmem:[#allocation2 + $0x3e8] sm:$0xff] %vm1323_vm13, %v1644_v35  ;;  %1661 = vst.msk [vmem:[#allocation2 + $0x368] sm:$0xff] %vm1323_vm13, %v1612_v19 }
 0x2ab   : > { %v1645_v47 = vpop.trf.xlu1  ;;  %v1613_v48 = vpop.trf.xlu0 }
 0x2ac   : > { %1678 = vst.msk [vmem:[#allocation2 + $0x3f0] sm:$0xff] %vm1323_vm13, %v1645_v47  ;;  %1662 = vst.msk [vmem:[#allocation2 + $0x370] sm:$0xff] %vm1323_vm13, %v1613_v48 }
 0x2af   : > { %v1646_v33 = vpop.trf.xlu1  ;;  %v1614_v58 = vpop.trf.xlu0 }
 0x2b0   : > { %1679 = vst.msk [vmem:[#allocation2 + $0x3f8] sm:$0xff] %vm1323_vm13, %v1646_v33  ;;  %1663 = vst.msk [vmem:[#allocation2 + $0x378] sm:$0xff] %vm1323_vm13, %v1614_v58 }
 0x2b1 LB: >> { %v2791_v8 = vmov 0   ;;  %s2276_s22 = sshll.u32 %s2779_s23, 3  ;;  %v4120_v32 = vld [vmem:[#allocation17_spill] sm:$0xff]  ;;  %v4121_v57 = vld [vmem:[#allocation18_spill] sm:$0xff]  ;;  %v4122_v62 = vld [vmem:[#allocation19_spill] sm:$0xff]  ;;  %v2792_v61 = vmov 0.0   ;;  %s2779_s23 = sphi %s3800_s23, %s1688_s23   ;;  %v2775_v34 = vphi %v3798_v34, %v4133_v34   ;;  %v2771_v12 = vphi %v3796_v12, %v4132_v12   ;;  %v2767_v25 = vphi %v3794_v25, %v4131_v25   ;;  %v2763_v45 = vphi %v3792_v45, %v4130_v45   ;;  %v2759_v22 = vphi %v3790_v22, %v4129_v22   ;;  %v2755_v38 = vphi %v3788_v38, %v4128_v38   ;;  %v2751_v14 = vphi %v3786_v14, %v4127_v14   ;;  %v2747_v13 = vphi %v3784_v13, %v4126_v13  }
 0x2b2   : >> { %2516 = vset.pattern.permute.xlu1 %v2791_v8  ;;  %2515 = vset.pattern.permute.xlu0 %v2791_v8  ;;  %s1698_s29 = scalar_lea.vmem [#allocation2], %s2276_s22  ;;  %v1703_v37 = vstv %s2276_s22  ;;  %v4123_v63 = vld [vmem:[#allocation28_spill] sm:$0xff]  ;;  %v4124_v36 = vld [vmem:[#allocation27_spill] sm:$0xff]  ;;  %s1688_s23 = sadd.s32 1, %s2779_s23  }
 0x2b3   : >> { %v1704_v40 = vadd.s32 %v1703_v37, %v4120_v32  ;;  %p1685_p4 = scmp.ge.s32.totalorder %s1688_s23, 32  }
 0x2b4   : > { %v4134_v32 = vld [vmem:[#allocation30_spill] sm:$0xff] (%p1685_p4)  ;;  %s2301_s24 = sshll.u32 (%p1685_p4), %s2910_s8, 4  ;;  %s2085_s5 = sshll.u32 (%p1685_p4), %s307_s11, 4  ;;  %s2086_s5 = int_to_ptr.vmem [resolvable:$true] %s2085_s5 }
 0x2b5   : >> { %vm1741_vm0 = vcmp.lt.s32.totalorder %v1704_v40, %v4121_v57  ;;  %vm1742_vm2 = vcmp.lt.s32.totalorder %v1704_v40, %v4122_v62  ;;  %v1837_v40 = vmul.f32 (%p1685_p4), 3.0, %v4134_v32  ;;  %s2083_s25 = scalar_lea.hbm (%p1685_p4), %s4005_s4, %s2301_s24  ;;  %s2073_s20 = scalar_lea.sflag (%p1685_p4), [#allocation5], %s3032_s9 }
 0x2b6   : > { %s2635_s13 = scalar_lea.vmem (%p1685_p4), %s2086_s5, 16  ;;  %p4139_p1 = scmp.ne.s32.totalorder (%p1685_p4), %s4041_s30, 0 }
 0x2b7   : >> { %v1701_v3 = vld [vmem:[%s1698_s29 + $0x200] sm:$0xff]  ;;  %p2636_p13 = scmp.ne.s32.totalorder (%p1685_p4), %s2086_s5, %s2635_s13  ;;  %s2793_s8 = smov (%p1685_p4), [#allocation11]  }
 0x2b8   : >> { %v1699_v20 = vld [vmem:[%s1698_s29] sm:$0xff]  ;;  %1717 = vperm.xlu1 %2516, %v1701_v3   ;;  %s2639_s14 = sshll.u32 (%p1685_p4), %s2793_s8, 4  ;;  %s2640_s14 = int_to_ptr.vmem [resolvable:$false] %s2639_s14 }
 0x2b9   : >> { %1707 = vperm.xlu0 %2515, %v1699_v20   ;;  %v1702_v30 = vld [vmem:[%s1698_s29 + $0x300] sm:$0xff]  ;;  %p2637_p12 = pnand (%p1685_p4), %p2636_p13, %p4139_p1  ;;  %s2641_s21 = scalar_lea.vmem (%p1685_p4), %s2640_s14, 32 }
 0x2ba   : >> { %v1700_v52 = vld [vmem:[%s1698_s29 + $0x100] sm:$0xff]  ;;  %p2642_p7 = scmp.lt.s32.totalorder (%p1685_p4), %s2086_s5, %s2640_s14  ;;  %p2643_p0 = scmp.lt.s32.totalorder (%p1685_p4), %s2641_s21, %s2635_s13 }
 0x2bb   : > { %p2638_p2 = pneg (%p1685_p4), %p2637_p12 }
 0x2bc   : >> { %1722 = vperm.xlu1 %2516, %v1702_v30   ;;  %v1835_v30 = vmul.f32 (%p1685_p4), 3.0, %v3512_v50  ;;  %p2644_p5 = por (%p1685_p4), %p2643_p0, %p2642_p7 }
 0x2bd   : >> { %1712 = vperm.xlu0 %2515, %v1700_v52  }
 0x2be   : > { %p2645_p9 = pnand (%p1685_p4), %p2644_p5, %p2638_p2 }
 0x333   : >> { %v1718_v2 = vpop.permute.xlu1 %1717 }
 0x334   : >> { %v1708_v1 = vpop.permute.xlu0 %1707  ;;  %vm1729_vm5 = vcmp.gt.f32.partialorder %v1718_v2, %v3663_v16  ;;  %vm1737_vm6 = vcmp.eq.f32.partialorder %v1718_v2, %v3663_v16  ;;  %vm1738_vm8 = vcmp.eq.f32.partialorder %v1718_v2, %v3660_v26  ;;  %vm1730_vm10 = vcmp.gt.f32.partialorder %v1718_v2, %v3660_v26 }
 0x335   : >> { %vm1751_vm12 = vmand %vm1737_vm6, %vm1741_vm0  ;;  %vm1733_vm15 = vcmp.eq.f32.partialorder %v1708_v1, %v4123_v63  ;;  %vm1734_vm3 = vcmp.eq.f32.partialorder %v1708_v1, %v4124_v36  ;;  %vm1725_vm9 = vcmp.gt.f32.partialorder %v1708_v1, %v4123_v63  ;;  %vm1726_vm4 = vcmp.gt.f32.partialorder %v1708_v1, %v4124_v36 }
 0x336   : >> { %vm1752_vm14 = vmand %vm1738_vm8, %vm1742_vm2 }
 0x337   : >> { %vm1759_vm11 = vmor %vm1729_vm5, %vm1751_vm12  ;;  %v1723_v9 = vpop.permute.xlu1 %1722 }
 0x338   : >> { %vm1760_vm7 = vmor %vm1730_vm10, %vm1752_vm14  ;;  %v2281_v15 = vsel %vm1759_vm11, 1.0, %v2792_v61  ;;  %vm1739_vm5 = vcmp.eq.f32.partialorder %v1723_v9, %v3683_v7  ;;  %vm1740_vm10 = vcmp.eq.f32.partialorder %v1723_v9, %v3680_v51  ;;  %v1713_v21 = vpop.permute.xlu0 %1712  ;;  %vm1731_vm14 = vcmp.gt.f32.partialorder %v1723_v9, %v3683_v7 }
 0x339   : >> { %v2282_v41 = vsel %vm1760_vm7, 1.0, %v2792_v61  ;;  %v1783_v49 = vadd.f32 %v2759_v22, %v2281_v15   ;;  %vm1747_vm13 = vmand %vm1733_vm15, %vm1741_vm0  ;;  %vm1732_vm11 = vcmp.gt.f32.partialorder %v1723_v9, %v3680_v51  ;;  %vm1735_vm7 = vcmp.eq.f32.partialorder %v1713_v21, %v3630_v27 }
 0x33a   : >> { %v1784_v60 = vadd.f32 %v2755_v38, %v2282_v41   ;;  %vm1748_vm6 = vmand %vm1734_vm3, %vm1742_vm2 }
 0x33b   : >> { %vm1755_vm8 = vmor %vm1725_vm9, %vm1747_vm13  ;;  %vm1736_vm13 = vcmp.eq.f32.partialorder %v1713_v21, %v3627_v0  ;;  %v4129_v22 = vmov %v1783_v49  ;;  %v1811_v52 = vrot.slane (%p1685_p4), %v1783_v49, 4 }
 0x33c   : >> { %vm1756_vm12 = vmor %vm1726_vm4, %vm1748_vm6  ;;  %v2277_v46 = vsel %vm1755_vm8, 1.0, %v2792_v61  ;;  %vm1727_vm6 = vcmp.gt.f32.partialorder %v1713_v21, %v3630_v27  ;;  %vm1728_vm8 = vcmp.gt.f32.partialorder %v1713_v21, %v3627_v0  ;;  %v1817_v37 = vrot.slane (%p1685_p4), %v1784_v60, 4 }
 0x33d   : >> { %v2278_v18 = vsel %vm1756_vm12, 1.0, %v2792_v61  ;;  %v1779_v29 = vadd.f32 %v2775_v34, %v2277_v46   ;;  %vm1753_vm15 = vmand %vm1739_vm5, %vm1741_vm0  ;;  %v1812_v15 = vadd.f32 (%p1685_p4), %v1811_v52, %v1783_v49  ;;  %v1841_v21 = vmin.f32 (%p1685_p4), %v1837_v40, 256.0 }
 0x33e   : >> { %v1780_v35 = vadd.f32 %v2771_v12, %v2278_v18   ;;  %vm1754_vm3 = vmand %vm1740_vm10, %vm1742_vm2  ;;  %v1818_v41 = vadd.f32 (%p1685_p4), %v1817_v37, %v1784_v60  ;;  %v1836_v27 = vmul.f32 (%p1685_p4), 3.0, %v3516_v54 }
 0x33f   : >> { %vm1761_vm9 = vmor %vm1731_vm14, %vm1753_vm15  ;;  %v4133_v34 = vmov %v1779_v29  ;;  %v1813_v0 = vrot.slane (%p1685_p4), %v1812_v15, 2 }
 0x340   : >> { %vm1762_vm4 = vmor %vm1732_vm11, %vm1754_vm3  ;;  %v2283_v19 = vsel %vm1761_vm9, 1.0, %v2792_v61  ;;  %v4132_v12 = vmov %v1780_v35  ;;  %v1787_v34 = vrot.slane (%p1685_p4), %v1779_v29, 4  ;;  %v1793_v20 = vrot.slane (%p1685_p4), %v1780_v35, 4 }
 0x341   : >> { %v2284_v47 = vsel %vm1762_vm4, 1.0, %v2792_v61  ;;  %v1785_v48 = vadd.f32 %v2751_v14, %v2283_v19   ;;  %vm1749_vm5 = vmand %vm1735_vm7, %vm1741_vm0  ;;  %v1819_v26 = vrot.slane (%p1685_p4), %v1818_v41, 2  ;;  %v1814_v22 = vadd.f32 (%p1685_p4), %v1813_v0, %v1812_v15 }
 0x342   : >> { %v3857_v13 = vadd.f32 %v2747_v13, %v2284_v47   ;;  %vm1750_vm10 = vmand %vm1736_vm13, %vm1742_vm2  ;;  %v1788_v1 = vadd.f32 (%p1685_p4), %v1787_v34, %v1779_v29  ;;  %v1794_v9 = vadd.f32 (%p1685_p4), %v1793_v20, %v1780_v35  ;;  %vm2019_vm4 = vcmp.gt.f32.partialorder (%p1685_p4), %v3512_v50, 0.0 }
 0x343   : >> { %vm1757_vm12 = vmor %vm1727_vm6, %vm1749_vm5  ;;  %v4127_v14 = vmov %v1785_v48  ;;  %v1823_v7 = vrot.slane (%p1685_p4), %v1785_v48, 4  ;;  %vm2021_vm6 = vcmp.gt.f32.partialorder (%p1685_p4), %v4134_v32, 0.0 }
 0x344   : >> { %v4125_v33 = vmov %v3857_v13  ;;  %vm1758_vm14 = vmor %vm1728_vm8, %vm1750_vm10  ;;  %v2279_v58 = vsel %vm1757_vm12, 1.0, %v2792_v61  ;;  %1687 = sbr.rel (!%p1685_p4) target bundleno = 689 (0x2b1), region = 120  ;;  %v1789_v19 = vrot.slane (%p1685_p4), %v1788_v1, 2  ;;  %v1795_v47 = vrot.slane (%p1685_p4), %v1794_v9, 2 }
 0x345   : >> { %v2280_v38 = vsel %vm1758_vm14, 1.0, %v2792_v61  ;;  %v1781_v8 = vadd.f32 %v2767_v25, %v2279_v58   ;;  %v4126_v13 = vmov %v4125_v33  ;;  %v1839_v61 = vmin.f32 (%p1685_p4), %v1835_v30, 256.0 }
 0x346   : >> { %v1782_v3 = vadd.f32 %v2763_v45, %v2280_v38   ;;  %v4128_v38 = vmov %v1784_v60  ;;  %v1790_v13 = vadd.f32 (%p1685_p4), %v1789_v19, %v1788_v1  ;;  %v1796_v14 = vadd.f32 (%p1685_p4), %v1795_v47, %v1794_v9 }
 0x347   : >> { %v4131_v25 = vmov %v1781_v8  ;;  %v1799_v57 = vrot.slane (%p1685_p4), %v1781_v8, 4  ;;  %v1824_v63 = vadd.f32 (%p1685_p4), %v1823_v7, %v1785_v48  ;;  %v1815_v60 = vrot.slane (%p1685_p4), %v1814_v22, 1 }
 0x348   : >> { %v4130_v45 = vmov %v1782_v3  ;;  %v1805_v2 = vrot.slane (%p1685_p4), %v1782_v3, 4  ;;  %v1820_v25 = vadd.f32 (%p1685_p4), %v1819_v26, %v1818_v41  ;;  %v1791_v36 = vrot.slane (%p1685_p4), %v1790_v13, 1 }
 0x349   : > { %v1800_v46 = vadd.f32 %v1799_v57, %v1781_v8  ;;  %v1840_v45 = vmin.f32 %v1836_v27, 256.0  ;;  %v1797_v49 = vrot.slane %v1796_v14, 1  ;;  %v1829_v29 = vrot.slane %v4125_v33, 4 }
 0x34a   : > { %v1806_v18 = vadd.f32 %v1805_v2, %v1782_v3  ;;  %v1821_v35 = vrot.slane %v1820_v25, 1  ;;  %v1825_v8 = vrot.slane %v1824_v63, 2  ;;  %v1792_v3 = vadd.f32 %v1791_v36, %v1790_v13 }
 0x34b   : > { %v1801_v16 = vrot.slane %v1800_v46, 2  ;;  %v1798_v34 = vadd.f32 %v1797_v49, %v1796_v14  ;;  %v1816_v20 = vadd.f32 %v1815_v60, %v1814_v22  ;;  %v1830_v30 = vadd.f32 %v1829_v29, %v4125_v33 }
 0x34c   : > { %v1807_v51 = vrot.slane %v1806_v18, 2  ;;  %v1822_v52 = vadd.f32 %v1821_v35, %v1820_v25  ;;  %v1826_v57 = vadd.f32 %v1825_v8, %v1824_v63  ;;  %vm1843_vm0 = vcmp.lt.f32.partialorder %v1792_v3, %v1839_v61  ;;  %v4137_v8 = vld [vmem:[#allocation26_spill] sm:$0xff] }
 0x34d   : > { %v1802_v12 = vadd.f32 %v1801_v16, %v1800_v46  ;;  %vm1844_vm2 = vcmp.lt.f32.partialorder %v1798_v34, %v1839_v61  ;;  %vm1847_vm11 = vcmp.lt.f32.partialorder %v1816_v20, %v1841_v21  ;;  %v1831_v48 = vrot.slane %v1830_v30, 2 }
 0x34e   : > { %v1808_v62 = vadd.f32 %v1807_v51, %v1806_v18  ;;  %v4135_v2 = vmov 0.0   ;;  %vm1848_vm15 = vcmp.lt.f32.partialorder %v1822_v52, %v1841_v21  ;;  %v1827_v61 = vrot.slane %v1826_v57, 1 }
 0x34f   : > { %v1803_v58 = vrot.slane %v1802_v12, 1  ;;  %v2285_v1 = vsel %vm1843_vm0, 1.0, %v4135_v2  ;;  %v2286_v9 = vsel %vm1844_vm2, 1.0, %v4135_v2  ;;  %v2289_v15 = vsel %vm1847_vm11, 1.0, %v4135_v2 }
 0x350   : > { %v1809_v38 = vrot.slane %v1808_v62, 1  ;;  %v1875_v41 = vcombine.low %v2285_v1, %v2286_v9  ;;  %v2290_v46 = vsel %vm1848_vm15, 1.0, %v4135_v2  ;;  %v1832_v27 = vadd.f32 %v1831_v48, %v1830_v30 }
 0x351   : > { %v1804_v37 = vadd.f32 %v1803_v58, %v1802_v12  ;;  %v1905_v33 = vcombine.low %v2289_v15, %v2290_v46  ;;  %v1838_v26 = vmul.f32 3.0, %v3510_v6  ;;  %v1828_v16 = vadd.f32 %v1827_v61, %v1826_v57  ;;  %v4136_v58 = vld [vmem:[#allocation25_spill] sm:$0xff] }
 0x352   : > { %v1810_v40 = vadd.f32 %v1809_v38, %v1808_v62  ;;  %v1882_v47 = vrot.slane %v1875_v41, %v3242_v55  ;;  %v1833_v13 = vrot.slane %v1832_v27, 1  ;;  %vm2022_vm12 = vcmp.gt.f32.partialorder %v3510_v6, 0.0 }
 0x353   : > { %vm1845_vm3 = vcmp.lt.f32.partialorder %v1804_v37, %v1840_v45  ;;  %v1912_v21 = vrot.slane %v1905_v33, %v3242_v55  ;;  %v1842_v14 = vmin.f32 %v1838_v26, 256.0  ;;  %v2033_v26 = vmax.f32 %v4134_v32, 1e-06 }
 0x354   : > { %vm1846_vm7 = vcmp.lt.f32.partialorder %v1810_v40, %v1840_v45  ;;  %v2287_v18 = vsel %vm1845_vm3, 1.0, %v4135_v2  ;;  %v1889_v51 = vrot.slane %v1882_v47, %v3242_v55  ;;  %v1834_v12 = vadd.f32 %v1833_v13, %v1832_v27  ;;  %v4138_v13 = vld [vmem:[#allocation18_spill] sm:$0xff] }
 0x355   : > { %v2288_v19 = vsel %vm1846_vm7, 1.0, %v4135_v2  ;;  %v1919_v22 = vrot.slane %v1912_v21, %v3242_v55  ;;  %vm1849_vm9 = vcmp.lt.f32.partialorder %v1828_v16, %v1842_v14  ;;  %v2295_v21 = vsel %vm2021_vm6, 1.0, %v4135_v2 }
 0x356   : > { %v1890_v0 = vcombine.low %v2287_v18, %v2288_v19  ;;  %v1939_v45 = vadd.f32 %v3137_v31, %v1889_v51  ;;  %v2291_v63 = vsel %vm1849_vm9, 1.0, %v4135_v2  ;;  %vm1850_vm13 = vcmp.lt.f32.partialorder %v1834_v12, %v1842_v14 }
 0x357   : > { %v1941_v62 = vadd.f32 %v3083_v11, %v1919_v22  ;;  %v2292_v31 = vsel %vm1850_vm13, 1.0, %v4135_v2  ;;  %vm2047_vm8 = vcmp.eq.s32.totalorder %v4138_v13, 0  ;;  %vm2048_vm5 = vcmp.eq.s32.totalorder %v4138_v13, 1 }
 0x358   : > { %v1897_v7 = vrot.slane %v1890_v0, %v3242_v55  ;;  %v1950_v36 = vrot.slane %v1939_v45, %v3064_v4  ;;  %v1954_v49 = vrot.slane %v1939_v45, %v3067_v5  ;;  %vm2049_vm10 = vcmp.eq.s32.totalorder %v4138_v13, 2 }
 0x359   : > { %v1966_v29 = vrot.slane %v1941_v62, %v3064_v4  ;;  %v1970_v35 = vrot.slane %v1941_v62, %v3067_v5  ;;  %v2297_v62 = vsel %vm2047_vm8, 1.0, %v4135_v2  ;;  %vm2063_vm14 = vcmask 24576  }
 0x35a   : > { %v1904_v25 = vrot.slane %v1897_v7, %v3242_v55  ;;  %v1987_v38 = vmul.f32 %v1950_v36, %v4136_v58  ;;  %v1988_v3 = vmul.f32 %v1954_v49, %v4137_v8  ;;  %v2299_v49 = vsel %vm2049_vm10, 1.0, %v4135_v2 }
 0x35b   : > { %v1991_v20 = vmul.f32 %v1966_v29, %v3581_v42  ;;  %v1992_v30 = vmul.f32 %v1970_v35, %v3585_v10  ;;  %vm2050_vm0 = vcmp.eq.s32.totalorder %v4138_v13, 3 }
 0x35c   : > { %v1940_v60 = vadd.f32 %v3151_v39, %v1904_v25  ;;  %v1920_v39 = vcombine.low %v2291_v63, %v2292_v31  ;;  %v1995_v52 = vsel %vm388_vm1, %v1987_v38, 0.0  ;;  %v1996_v37 = vsel %vm388_vm1, %v1988_v3, 0.0 }
 0x35d   : > { %v1997_v48 = vadd.f32 %v1996_v37, %v1995_v52  ;;  %v2005_v1 = vsel %vm388_vm1, %v1991_v20, 0.0  ;;  %v2006_v9 = vsel %vm388_vm1, %v1992_v30, 0.0  ;;  %v2298_v63 = vsel %vm2048_vm5, 1.0, %v4135_v2 }
 0x35e   : > { %v1958_v11 = vrot.slane %v1940_v60, %v3064_v4  ;;  %v1962_v34 = vrot.slane %v1940_v60, %v3067_v5  ;;  %v1927_v15 = vrot.slane %v1920_v39, %v3242_v55  ;;  %v2007_v41 = vadd.f32 %v2006_v9, %v2005_v1 }
 0x35f   : > { %1998 = vadd.xlane.f32.xlu0 %v1997_v48 }
 0x360   : > { %v1989_v40 = vmul.f32 %v1958_v11, %v3546_v56  ;;  %v1990_v57 = vmul.f32 %v1962_v34, %v3552_v23  ;;  %v1934_v33 = vrot.slane %v1927_v15, %v3242_v55  ;;  %2008 = vadd.xlane.f32.xlu1 %v2007_v41  ;;  %v2031_v55 = vmax.f32 %v3512_v50, 1e-06 }
 0x361   : > { %v2300_v34 = vsel %vm2050_vm0, 1.0, %v4135_v2 }
 0x362   : > { %v2000_v42 = vsel %vm388_vm1, %v1989_v40, 0.0  ;;  %v2001_v10 = vsel %vm388_vm1, %v1990_v57, 0.0  ;;  %v1942_v56 = vadd.f32 %v3105_v17, %v1934_v33  ;;  %2517 = vrcp.f32 %v2031_v55 }
 0x363   : > { %v2002_v46 = vadd.f32 %v2001_v10, %v2000_v42  ;;  %v2032_v17 = vmax.f32 %v3516_v54, 1e-06  ;;  %2519 = vrcp.f32 %v2033_v26 }
 0x364   : > { %v1974_v23 = vrot.slane %v1942_v56, %v3064_v4  ;;  %v1978_v18 = vrot.slane %v1942_v56, %v3067_v5  ;;  %v2034_v4 = vmax.f32 %v3510_v6, 1e-06  ;;  %v2293_v5 = vsel %vm2019_vm4, 1.0, %v4135_v2 }
 0x365   : > { %2003 = vadd.xlane.f32.xlu0 %v2002_v46  ;;  %2521 = vrcp.f32 %v2032_v17 }
 0x366   : > { %v1993_v19 = vmul.f32 %v1974_v23, %v3614_v28  ;;  %v1994_v61 = vmul.f32 %v1978_v18, %v3618_v43  ;;  %2523 = vrcp.f32 %v2034_v4 }
 0x368   : > { %v2010_v47 = vsel %vm388_vm1, %v1993_v19, 0.0  ;;  %v2011_v0 = vsel %vm388_vm1, %v1994_v61, 0.0  ;;  %vm2020_vm1 = vcmp.gt.f32.partialorder %v3516_v54, 0.0 }
 0x369   : > { %v2012_v27 = vadd.f32 %v2011_v0, %v2010_v47  ;;  %v2294_v32 = vsel %vm2020_vm1, 1.0, %v4135_v2 }
 0x36b   : > { %2013 = vadd.xlane.f32.xlu1 %v2012_v27 }
 0x36f   : > { %v2518_v51 = vpop.eup %2517 }
 0x370   : > { %v2520_v45 = vpop.eup %2519 }
 0x372   : > { %v2522_v12 = vpop.eup %2521 }
 0x373   : > { %v2524_v38 = vpop.eup %2523 }
 0x3e8   : > { %v1999_v28 = vpop.xlane.xlu0 %1998 }
 0x3e9   : > { %v2015_v43 = vadd.f32 %v1999_v28, %v3671_v53  ;;  %v2009_v16 = vpop.xlane.xlu1 %2008 }
 0x3ea   : > { %v2017_v7 = vadd.f32 %v2009_v16, %v3673_v44 }
 0x3eb   : > { %v2035_v14 = vmul.f32 %v2293_v5, %v2015_v43 }
 0x3ec   : > { %v2037_v50 = vmul.f32 %v2295_v21, %v2017_v7 }
 0x3ed   : > { %v2040_v25 = vmul.f32 %v2518_v51, %v2035_v14 }
 0x3ee   : > { %v2004_v22 = vpop.xlane.xlu0 %2003  ;;  %v2044_v44 = vmul.f32 %v2520_v45, %v2037_v50 }
 0x3ef   : > { %v2016_v53 = vadd.f32 %v2004_v22, %v3667_v59  ;;  %v2059_v36 = vmul.f32 %v2297_v62, %v2040_v25  ;;  %v2296_v59 = vsel %vm2022_vm12, 1.0, %v4135_v2 }
 0x3f0   : > { %v2061_v31 = vmul.f32 %v2299_v49, %v2044_v44 }
 0x3f1   : > { %v2036_v54 = vmul.f32 %v2294_v32, %v2016_v53  ;;  %v2064_v6 = vsel %vm2063_vm14, %v2059_v36, 0.0 }
 0x3f2   : > { %v2067_v30 = vsel %vm2063_vm14, %v2061_v31, 0.0 }
 0x3f3   : > { %v2042_v60 = vmul.f32 %v2522_v12, %v2036_v54 }
 0x3f4   : > { %v2014_v35 = vpop.xlane.xlu1 %2013 }
 0x3f5   : > { %v2060_v29 = vmul.f32 %v2298_v63, %v2042_v60  ;;  %v2018_v58 = vadd.f32 %v2014_v35, %v3669_v24 }
 0x3f7   : > { %v2065_v8 = vsel %vm2063_vm14, %v2060_v29, 0.0  ;;  %v2038_v11 = vmul.f32 %v2296_v59, %v2018_v58 }
 0x3f8   : > { %v2066_v3 = vadd.f32 %v2065_v8, %v2064_v6 }
 0x3f9   : > { %v2046_v20 = vmul.f32 %v2524_v38, %v2038_v11 }
 0x3fa   : > { %v2068_v39 = vadd.f32 %v2067_v30, %v2066_v3 }
 0x3fb   : > { %v2062_v52 = vmul.f32 %v2300_v34, %v2046_v20 }
 0x3fd   : > { %v2069_v24 = vsel %vm2063_vm14, %v2062_v52, 0.0 }
 0x3fe   : > { %v2070_v37 = vadd.f32 %v2069_v24, %v2068_v39 }
 0x400   : > { %2071 = vst.msk [vmem:[%s307_s11] sm:$0x1] %vm2063_vm14, %v2070_v37 }
 0x401   : > { %2648 = shalt.err (!%p2645_p9)
}
 0x402   : > { %s2649_s26 = scalar_lea.hbm %s2083_s25, 16  ;;  %s2653_s12 = scalar_lea.hbm %s4005_s4, 32 }
 0x403   : > { %p2650_p10 = scmp.ne.s32.totalorder %s2083_s25, %s2649_s26  ;;  %p2654_p6 = scmp.lt.s32.totalorder %s2083_s25, %s4005_s4 }
 0x404   : > { %p2655_p3 = scmp.lt.s32.totalorder %s2653_s12, %s2649_s26 }
 0x405   : > { %p2651_p8 = pnand %p2650_p10, %p4139_p1 }
 0x406   : > { %p2656_p4 = por %p2655_p3, %p2654_p6 }
 0x407   : > { %p2652_p11 = pneg %p2651_p8 }
 0x409   : > { %p2657_p13 = pnand %p2656_p4, %p2652_p11 }
 0x40b   : > { %2660 = shalt.err (!%p2657_p13)
}
 0x40c   : > { %2320 = dma.vmem_to_hbm [thread:$0]  (%p4139_p1), %s2086_s5, 16, %s2083_s25, %s2073_s20  }
 0x40d PF: > { %s2097_s11 = sand.u32 1, %s2731_s15   ;;  %p4140_p12 = scmp.ne.s32.totalorder %s4042_s6, 0 }
 0x40e   : > { %p4141_p2 = scmp.ge.s32.totalorder %s2743_s18, 2  ;;  %s2098_s23 = scalar_lea.sflag [#allocation5], %s2097_s11 }
 0x410   : > { %p2337_p7 = pnand %p4141_p2, %p4140_p12 }
 0x412   : > { %p2338_p0 = pneg %p2337_p7 }
 0x414   : > { %2726 = dma.done.wait (%p2338_p0), %s2098_s23, 16  }
 0x415   : > { %2728 = vsyncadd (%p2338_p0), %s2098_s23, 4294967280  ;;  %s4142_s22 = sld [smem:[#allocation16_spill]]  ;;  %p21_p5 = scmp.ge.s32.totalorder %s2840_s19, 4  }
 0x416   : > { %s4143_s15 = smov %s2735_s16  ;;  %s4144_s16 = smov %s2739_s17 }
 0x417   : > { %s4146_s18 = smov %s2840_s19  ;;  %23 = sbr.rel (!%p21_p5) target bundleno = 10 (0xa), region = 131 }
 0x41b   : > { %s4145_s17 = smov %s4142_s22 }
 0x41c   :  { %2102 = vsyncpa [#allocation4], 1 }
 0x41d   :  { %2104 = vsyncpa [#allocation4 + $0x1], 1 }
 0x41e   :  { %2105 = vsyncpa [#allocation7], 1 }
 0x41f   :  { %2107 = vsyncpa [#allocation7 + $0x1], 1 }
 0x420   :  { %2108 = vsyncpa [#allocation10], 1 }
 0x421   :  { %2109 = vsyncpa [#allocation5], 1 }
 0x422   :  { %2111 = vsyncpa [#allocation5 + $0x1], 1 }

</bundles_post_ra>
